<compile_context>
chip_gen: v7x
topology: tpu7x:2x2x1
jax: 0.10.0
libtpu: 0.0.40
codegen_flags: <defaults>
</compile_context>

<pallas_src>
import jax
import jax.numpy as jnp
from jax.experimental import pallas as pl
from jax.experimental.pallas import tpu as pltpu
import numpy as np


# ---------------------------------------------------------------------------
# Pallas kernel: single invocation processes the whole sequence.
# ---------------------------------------------------------------------------
def make_gru_kernel(T, Bp, Hp):
    def kernel(gi_ref,            # (T*Bp, 3*Hp) f32: pre-projected gates, gathered by token id
               whh_ref,           # (Hp, 3*Hp)  bf16: gate-concatenated hidden weights [r|z|n]
               bhn_ref,           # (1, Hp)     f32 : n-gate hidden bias (scaled by r)
               wc_ref,            # (Hp, OP)    bf16: folded dense1@dense2
               bc_ref,            # (1, OP)     f32 : folded head bias
               out_ref,           # (T*Bp, OP)  f32 : lane-dense output slab
               h_all):            # VMEM scratch (T*Bp, Hp) f32
        # hoist + pre-broadcast loop-invariant bias ONCE (not per unrolled iter)
        bhn_b = jnp.broadcast_to(bhn_ref[...], (Bp, Hp))

        # ---- sequential GRU recurrence: ONE MXU matmul + ONE wide sigmoid
        # ---- + ONE tanh per step; h carried in vregs, all tiles (8,128)-full.
        def step(t, h_prev):
            off = pl.multiple_of(t * Bp, Bp)
            gi = gi_ref[pl.ds(off, Bp), :]                          # (Bp, 3*Hp) f32
            gh = jnp.dot(h_prev.astype(jnp.bfloat16), whh_ref[...],
                         preferred_element_type=jnp.float32)        # (Bp, 3*Hp) f32 acc
            rz = jax.nn.sigmoid(gi[:, :2 * Hp] + gh[:, :2 * Hp])    # one EUP pass for r and z
            r = rz[:, :Hp]
            z = rz[:, Hp:]
            n = jnp.tanh(gi[:, 2 * Hp:] + r * (gh[:, 2 * Hp:] + bhn_b))
            h_new = (1.0 - z) * n + z * h_prev                       # f32 gate math
            h_all[pl.ds(off, Bp), :] = h_new
            return h_new

        h0 = jnp.zeros((Bp, Hp), jnp.float32)                        # PyTorch h0 = 0
        jax.lax.fori_loop(0, T, step, h0, unroll=True)

        # ---- folded dense1 @ dense2 on the whole hidden slab, one lane-dense write
        out_ref[...] = (jnp.dot(h_all[...].astype(jnp.bfloat16), wc_ref[...],
                                preferred_element_type=jnp.float32)
                        + bc_ref[...])
    return kernel


# ---------------------------------------------------------------------------
# Wrapper
# ---------------------------------------------------------------------------
def _pad_cols(w, new_cols):
    return jnp.zeros((w.shape[0], new_cols), w.dtype).at[:, :w.shape[1]].set(w)


def gru_forward(x_idx, params):
    """x_idx: int32 token ids of shape (B, T). Returns (B, T, output_dim)."""
    f32, bf16 = jnp.float32, jnp.bfloat16
    B, T = x_idx.shape
    H = params["w_hh_T"].shape[0]
    O = params["w2_T"].shape[1]
    Hp = ((H + 127) // 128) * 128                 # lane-aligned hidden width
    Bp = ((B + 7) // 8) * 8                       # sublane-aligned batch
    OP = ((O + 127) // 128) * 128                 # lane-dense padded output width

    # ---- split GRU weights per gate (PyTorch order r, z, n); fold ih+hh
    # biases for r and z (the n-gate hidden bias stays separate: scaled by r).
    wih, whh = params["w_ih_T"], params["w_hh_T"]        # (E,3H), (H,3H)
    bih, bhh = params["b_ih"], params["b_hh"]            # (1,3H)
    wir, wiz, win = wih[:, 0:H], wih[:, H:2 * H], wih[:, 2 * H:3 * H]
    whr, whz, whn = whh[:, 0:H], whh[:, H:2 * H], whh[:, 2 * H:3 * H]
    br = bih[:, 0:H] + bhh[:, 0:H]
    bz = bih[:, H:2 * H] + bhh[:, H:2 * H]
    bin_ = bih[:, 2 * H:3 * H]
    bhn = bhh[:, 2 * H:3 * H]

    # ---- gate-concatenated, lane-padded weights (padded lanes/rows are zero,
    # so padded hidden units stay exactly 0 through the recurrence).
    wi_cat = jnp.concatenate(
        [_pad_cols(wir, Hp), _pad_cols(wiz, Hp), _pad_cols(win, Hp)], axis=1)   # (E, 3*Hp)
    bi_cat = jnp.concatenate(
        [_pad_cols(br, Hp), _pad_cols(bz, Hp), _pad_cols(bin_, Hp)], axis=1)    # (1, 3*Hp)
    whh_cat = jnp.concatenate(
        [_pad_cols(whr, Hp), _pad_cols(whz, Hp), _pad_cols(whn, Hp)], axis=1)   # (H, 3*Hp)
    whh_cat = (jnp.zeros((Hp, 3 * Hp), f32).at[:H, :].set(whh_cat)).astype(bf16)
    bhn_p = _pad_cols(bhn, Hp)                                                   # (1, Hp)

    # ---- pre-projected embedding table: x @ W_ih is a one-hot gather, so the
    # whole input projection collapses to a table lookup (phase 1 deleted).
    gi_table = params["embedding"] @ wi_cat + bi_cat                 # (V, 3*Hp) f32

    # ---- fold dense1 -> Identity BN -> no activation -> inference dropout -> dense2
    wc = params["w1_T"] @ params["w2_T"]                             # (H, O)
    bc = params["b1"] @ params["w2_T"] + params["b2"]                # (1, O)
    wc_p = (jnp.zeros((Hp, OP), f32).at[:H, :O].set(wc)).astype(bf16)
    bc_p = jnp.zeros((1, OP), f32).at[:, :O].set(bc)

    # ---- time-major, batch-padded token ids; gather the pre-projected table.
    idx_pad = jnp.zeros((T, Bp), jnp.int32).at[:, :B].set(jnp.transpose(x_idx, (1, 0)))
    gi_all = jnp.take(gi_table, idx_pad.reshape(-1), axis=0)         # (T*Bp, 3*Hp) f32

    def fullspec(shape):
        return pl.BlockSpec(shape, lambda i: (0, 0))

    out_flat = pl.pallas_call(
        make_gru_kernel(T, Bp, Hp),
        out_shape=jax.ShapeDtypeStruct((T * Bp, OP), jnp.float32),
        grid_spec=pltpu.PrefetchScalarGridSpec(
            num_scalar_prefetch=0,
            grid=(1,),
            in_specs=[
                fullspec((T * Bp, 3 * Hp)),     # gi (pre-projected + gathered)
                fullspec((Hp, 3 * Hp)),         # W_hh gate-concat (bf16)
                fullspec((1, Hp)),              # b_hn
                fullspec((Hp, OP)),             # folded head weight (bf16)
                fullspec((1, OP)),              # folded head bias
            ],
            out_specs=fullspec((T * Bp, OP)),
            scratch_shapes=[
                pltpu.VMEM((T * Bp, Hp), jnp.float32),   # hidden-state slab
            ],
        ),
        compiler_params=pltpu.CompilerParams(
            dimension_semantics=("arbitrary",)),
    )(gi_all, whh_cat, bhn_p, wc_p, bc_p)

    # un-pad lanes + batch rows, reshape time-major rows back to (B, T, O)
    out = out_flat[:, :O].reshape(T, Bp, O)[:, :B, :]
    return jnp.transpose(out, (1, 0, 2))


# ---------------------------------------------------------------------------
# Pure-JAX reference (PyTorch GRU semantics, unfused, f32) for correctness
# ---------------------------------------------------------------------------
def gru_forward_ref(x_idx, params):
    emb = jnp.take(params["embedding"], x_idx, axis=0)   # (B, T, E)
    B, T, E = emb.shape
    H = params["w_hh_T"].shape[0]
    h0 = jnp.zeros((B, H), jnp.float32)

    def step(h, x_t):
        gi = x_t @ params["w_ih_T"] + params["b_ih"][0]
        gh = h @ params["w_hh_T"] + params["b_hh"][0]
        r = jax.nn.sigmoid(gi[:, 0:H] + gh[:, 0:H])
        z = jax.nn.sigmoid(gi[:, H:2 * H] + gh[:, H:2 * H])
        n = jnp.tanh(gi[:, 2 * H:] + r * gh[:, 2 * H:])
        h_new = (1.0 - z) * n + z * h
        return h_new, h_new

    _, hs = jax.lax.scan(step, h0, jnp.transpose(emb, (1, 0, 2)))   # (T, B, H)
    hs = jnp.transpose(hs, (1, 0, 2))                                # (B, T, H)
    y = hs @ params["w1_T"] + params["b1"][0]
    y = y @ params["w2_T"] + params["b2"][0]
    return y


# ---------------------------------------------------------------------------
# Deterministic parameter init
# ---------------------------------------------------------------------------
def init_params(key, vocab_size, embedding_dim, gru_units, output_dim):
    ks = jax.random.split(key, 9)
    s = 1.0 / np.sqrt(gru_units)
    f32 = jnp.float32
    return {
        "embedding": jax.random.normal(ks[0], (vocab_size, embedding_dim), f32),
        # GRU weights, stored pre-transposed (gate order: r, z, n as in PyTorch)
        "w_ih_T": jax.random.uniform(ks[1], (embedding_dim, 3 * gru_units), f32, -s, s),
        "w_hh_T": jax.random.uniform(ks[2], (gru_units, 3 * gru_units), f32, -s, s),
        "b_ih": jax.random.uniform(ks[3], (1, 3 * gru_units), f32, -s, s),
        "b_hh": jax.random.uniform(ks[4], (1, 3 * gru_units), f32, -s, s),
        # dense1
        "w1_T": jax.random.uniform(ks[5], (gru_units, gru_units), f32, -s, s),
        "b1": jax.random.uniform(ks[6], (1, gru_units), f32, -s, s),
        # dense2
        "w2_T": jax.random.uniform(ks[7], (gru_units, output_dim), f32, -s, s),
        "b2": jax.random.uniform(ks[8], (1, output_dim), f32, -s, s),
    }


if __name__ == "__main__":
    vocab_size, embedding_dim = 32, 16
    gru_units, output_dim = 64, 2
    batch, seq = 2, 8

    key = jax.random.PRNGKey(0)
    kp, kx = jax.random.split(key)
    params = init_params(kp, vocab_size, embedding_dim, gru_units, output_dim)
    x_idx = jax.random.randint(kx, (batch, seq), 0, vocab_size, dtype=jnp.int32)

    out = jax.block_until_ready(gru_forward(x_idx, params))
    ref = jax.block_until_ready(gru_forward_ref(x_idx, params))

    assert out.shape == (batch, seq, output_dim)
    # bf16 MXU operands (f32 accumulation) in the recurrence -> loosened tolerance
    np.testing.assert_allclose(np.asarray(out), np.asarray(ref), rtol=5e-2, atol=5e-3)

    print("KERNEL_OK")
</pallas_src>

<mosaic_0001>
module attributes {stable_mosaic.version = 11 : i64} {
  func.func @kernel(%arg0: i32, %arg1: memref<64x384xf32, #tpu.memory_space<vmem>>, %arg2: memref<128x384xbf16, #tpu.memory_space<vmem>>, %arg3: memref<1x128xf32, #tpu.memory_space<vmem>>, %arg4: memref<128x128xbf16, #tpu.memory_space<vmem>>, %arg5: memref<1x128xf32, #tpu.memory_space<vmem>>, %arg6: memref<64x128xf32, #tpu.memory_space<vmem>>, %arg7: memref<64x128xf32, #tpu.memory_space<vmem>>) attributes {dimension_semantics = [#tpu.dimension_semantics<arbitrary>], iteration_bounds = array<i64: 1>, scalar_prefetch = 0 : i64, scratch_operands = 1 : i64, tpu.core_type = #tpu.core_type<tc>, window_params = [{pipeline_mode = #tpu.pipeline_mode<synchronous>, transform_indices = @transform_0, window_bounds = array<i64: 64, 384>}, {pipeline_mode = #tpu.pipeline_mode<synchronous>, transform_indices = @transform_1, window_bounds = array<i64: 128, 384>}, {pipeline_mode = #tpu.pipeline_mode<synchronous>, transform_indices = @transform_2, window_bounds = array<i64: 1, 128>}, {pipeline_mode = #tpu.pipeline_mode<synchronous>, transform_indices = @transform_3, window_bounds = array<i64: 128, 128>}, {pipeline_mode = #tpu.pipeline_mode<synchronous>, transform_indices = @transform_4, window_bounds = array<i64: 1, 128>}, {pipeline_mode = #tpu.pipeline_mode<synchronous>, transform_indices = @transform_5, window_bounds = array<i64: 64, 128>}]} {
    %c0 = arith.constant 0 : index
    %c0_0 = arith.constant 0 : index
    %0 = vector.load %arg3[%c0, %c0_0] : memref<1x128xf32, #tpu.memory_space<vmem>>, vector<1x128xf32>
    %1 = vector.shape_cast %0 : vector<1x128xf32> to vector<1x128xf32>
    %2 = vector.broadcast %1 : vector<1x128xf32> to vector<8x128xf32>
    %cst = arith.constant 0.000000e+00 : f32
    %3 = vector.broadcast %cst : f32 to vector<8x128xf32>
    %c0_i32 = arith.constant 0 : i32
    %c8_i32 = arith.constant 8 : i32
    %4 = arith.muli %c0_i32, %c8_i32 : i32
    %5 = tpu.assume_multiple %4, 8 : i32
    %6 = arith.index_cast %5 : i32 to index
    %c0_1 = arith.constant 0 : index
    %7 = vector.load %arg1[%6, %c0_1] : memref<64x384xf32, #tpu.memory_space<vmem>>, vector<8x384xf32>
    %8 = arith.truncf %3 : vector<8x128xf32> to vector<8x128xbf16>
    %c0_2 = arith.constant 0 : index
    %c0_3 = arith.constant 0 : index
    %9 = vector.load %arg2[%c0_2, %c0_3] : memref<128x384xbf16, #tpu.memory_space<vmem>>, vector<128x384xbf16>
    %cst_4 = arith.constant dense<0.000000e+00> : vector<8x384xf32>
    %10 = tpu.matmul %8, %9, %cst_4 {dimension_numbers = #tpu.dot_dimension_numbers<[1], [0], [0], [1], [0, 0, 1, 1], [], []>} : vector<8x128xbf16>, vector<128x384xbf16>, vector<8x384xf32> -> vector<8x384xf32>
    %11 = vector.extract_strided_slice %7 {offsets = [0, 0], sizes = [8, 256], strides = [1, 1]} : vector<8x384xf32> to vector<8x256xf32>
    %12 = vector.extract_strided_slice %10 {offsets = [0, 0], sizes = [8, 256], strides = [1, 1]} : vector<8x384xf32> to vector<8x256xf32>
    %13 = arith.addf %11, %12 : vector<8x256xf32>
    %14 = arith.negf %13 : vector<8x256xf32>
    %15 = math.exp %14 : vector<8x256xf32>
    %cst_5 = arith.constant 1.000000e+00 : f32
    %16 = vector.broadcast %cst_5 : f32 to vector<8x256xf32>
    %17 = arith.addf %16, %15 : vector<8x256xf32>
    %18 = arith.divf %16, %17 : vector<8x256xf32>
    %19 = vector.extract_strided_slice %18 {offsets = [0, 0], sizes = [8, 128], strides = [1, 1]} : vector<8x256xf32> to vector<8x128xf32>
    %20 = vector.extract_strided_slice %18 {offsets = [0, 128], sizes = [8, 128], strides = [1, 1]} : vector<8x256xf32> to vector<8x128xf32>
    %21 = vector.extract_strided_slice %7 {offsets = [0, 256], sizes = [8, 128], strides = [1, 1]} : vector<8x384xf32> to vector<8x128xf32>
    %22 = vector.extract_strided_slice %10 {offsets = [0, 256], sizes = [8, 128], strides = [1, 1]} : vector<8x384xf32> to vector<8x128xf32>
    %23 = arith.addf %22, %2 : vector<8x128xf32>
    %24 = arith.mulf %19, %23 : vector<8x128xf32>
    %25 = arith.addf %21, %24 : vector<8x128xf32>
    %26 = math.tanh %25 : vector<8x128xf32>
    %cst_6 = arith.constant 1.000000e+00 : f32
    %27 = vector.broadcast %cst_6 : f32 to vector<8x128xf32>
    %28 = arith.subf %27, %20 : vector<8x128xf32>
    %29 = arith.mulf %28, %26 : vector<8x128xf32>
    %30 = arith.mulf %20, %3 : vector<8x128xf32>
    %31 = arith.addf %29, %30 : vector<8x128xf32>
    %32 = arith.index_cast %5 : i32 to index
    %c0_7 = arith.constant 0 : index
    %33 = vector.load %arg7[%32, %c0_7] : memref<64x128xf32, #tpu.memory_space<vmem>>, vector<8x128xf32>
    tpu.vector_store %arg7[%32, %c0_7], %31 {strides = array<i32>} : memref<64x128xf32, #tpu.memory_space<vmem>>, vector<8x128xf32>,
    %c1_i32 = arith.constant 1 : i32
    %c8_i32_8 = arith.constant 8 : i32
    %34 = arith.muli %c1_i32, %c8_i32_8 : i32
    %35 = tpu.assume_multiple %34, 8 : i32
    %36 = arith.index_cast %35 : i32 to index
    %c0_9 = arith.constant 0 : index
    %37 = vector.load %arg1[%36, %c0_9] : memref<64x384xf32, #tpu.memory_space<vmem>>, vector<8x384xf32>
    %38 = arith.truncf %31 : vector<8x128xf32> to vector<8x128xbf16>
    %c0_10 = arith.constant 0 : index
    %c0_11 = arith.constant 0 : index
    %39 = vector.load %arg2[%c0_10, %c0_11] : memref<128x384xbf16, #tpu.memory_space<vmem>>, vector<128x384xbf16>
    %cst_12 = arith.constant dense<0.000000e+00> : vector<8x384xf32>
    %40 = tpu.matmul %38, %39, %cst_12 {dimension_numbers = #tpu.dot_dimension_numbers<[1], [0], [0], [1], [0, 0, 1, 1], [], []>} : vector<8x128xbf16>, vector<128x384xbf16>, vector<8x384xf32> -> vector<8x384xf32>
    %41 = vector.extract_strided_slice %37 {offsets = [0, 0], sizes = [8, 256], strides = [1, 1]} : vector<8x384xf32> to vector<8x256xf32>
    %42 = vector.extract_strided_slice %40 {offsets = [0, 0], sizes = [8, 256], strides = [1, 1]} : vector<8x384xf32> to vector<8x256xf32>
    %43 = arith.addf %41, %42 : vector<8x256xf32>
    %44 = arith.negf %43 : vector<8x256xf32>
    %45 = math.exp %44 : vector<8x256xf32>
    %cst_13 = arith.constant 1.000000e+00 : f32
    %46 = vector.broadcast %cst_13 : f32 to vector<8x256xf32>
    %47 = arith.addf %46, %45 : vector<8x256xf32>
    %48 = arith.divf %46, %47 : vector<8x256xf32>
    %49 = vector.extract_strided_slice %48 {offsets = [0, 0], sizes = [8, 128], strides = [1, 1]} : vector<8x256xf32> to vector<8x128xf32>
    %50 = vector.extract_strided_slice %48 {offsets = [0, 128], sizes = [8, 128], strides = [1, 1]} : vector<8x256xf32> to vector<8x128xf32>
    %51 = vector.extract_strided_slice %37 {offsets = [0, 256], sizes = [8, 128], strides = [1, 1]} : vector<8x384xf32> to vector<8x128xf32>
    %52 = vector.extract_strided_slice %40 {offsets = [0, 256], sizes = [8, 128], strides = [1, 1]} : vector<8x384xf32> to vector<8x128xf32>
    %53 = arith.addf %52, %2 : vector<8x128xf32>
    %54 = arith.mulf %49, %53 : vector<8x128xf32>
    %55 = arith.addf %51, %54 : vector<8x128xf32>
    %56 = math.tanh %55 : vector<8x128xf32>
    %cst_14 = arith.constant 1.000000e+00 : f32
    %57 = vector.broadcast %cst_14 : f32 to vector<8x128xf32>
    %58 = arith.subf %57, %50 : vector<8x128xf32>
    %59 = arith.mulf %58, %56 : vector<8x128xf32>
    %60 = arith.mulf %50, %31 : vector<8x128xf32>
    %61 = arith.addf %59, %60 : vector<8x128xf32>
    %62 = arith.index_cast %35 : i32 to index
    %c0_15 = arith.constant 0 : index
    %63 = vector.load %arg7[%62, %c0_15] : memref<64x128xf32, #tpu.memory_space<vmem>>, vector<8x128xf32>
    tpu.vector_store %arg7[%62, %c0_15], %61 {strides = array<i32>} : memref<64x128xf32, #tpu.memory_space<vmem>>, vector<8x128xf32>,
    %c2_i32 = arith.constant 2 : i32
    %c8_i32_16 = arith.constant 8 : i32
    %64 = arith.muli %c2_i32, %c8_i32_16 : i32
    %65 = tpu.assume_multiple %64, 8 : i32
    %66 = arith.index_cast %65 : i32 to index
    %c0_17 = arith.constant 0 : index
    %67 = vector.load %arg1[%66, %c0_17] : memref<64x384xf32, #tpu.memory_space<vmem>>, vector<8x384xf32>
    %68 = arith.truncf %61 : vector<8x128xf32> to vector<8x128xbf16>
    %c0_18 = arith.constant 0 : index
    %c0_19 = arith.constant 0 : index
    %69 = vector.load %arg2[%c0_18, %c0_19] : memref<128x384xbf16, #tpu.memory_space<vmem>>, vector<128x384xbf16>
    %cst_20 = arith.constant dense<0.000000e+00> : vector<8x384xf32>
    %70 = tpu.matmul %68, %69, %cst_20 {dimension_numbers = #tpu.dot_dimension_numbers<[1], [0], [0], [1], [0, 0, 1, 1], [], []>} : vector<8x128xbf16>, vector<128x384xbf16>, vector<8x384xf32> -> vector<8x384xf32>
    %71 = vector.extract_strided_slice %67 {offsets = [0, 0], sizes = [8, 256], strides = [1, 1]} : vector<8x384xf32> to vector<8x256xf32>
    %72 = vector.extract_strided_slice %70 {offsets = [0, 0], sizes = [8, 256], strides = [1, 1]} : vector<8x384xf32> to vector<8x256xf32>
    %73 = arith.addf %71, %72 : vector<8x256xf32>
    %74 = arith.negf %73 : vector<8x256xf32>
    %75 = math.exp %74 : vector<8x256xf32>
    %cst_21 = arith.constant 1.000000e+00 : f32
    %76 = vector.broadcast %cst_21 : f32 to vector<8x256xf32>
    %77 = arith.addf %76, %75 : vector<8x256xf32>
    %78 = arith.divf %76, %77 : vector<8x256xf32>
    %79 = vector.extract_strided_slice %78 {offsets = [0, 0], sizes = [8, 128], strides = [1, 1]} : vector<8x256xf32> to vector<8x128xf32>
    %80 = vector.extract_strided_slice %78 {offsets = [0, 128], sizes = [8, 128], strides = [1, 1]} : vector<8x256xf32> to vector<8x128xf32>
    %81 = vector.extract_strided_slice %67 {offsets = [0, 256], sizes = [8, 128], strides = [1, 1]} : vector<8x384xf32> to vector<8x128xf32>
    %82 = vector.extract_strided_slice %70 {offsets = [0, 256], sizes = [8, 128], strides = [1, 1]} : vector<8x384xf32> to vector<8x128xf32>
    %83 = arith.addf %82, %2 : vector<8x128xf32>
    %84 = arith.mulf %79, %83 : vector<8x128xf32>
    %85 = arith.addf %81, %84 : vector<8x128xf32>
    %86 = math.tanh %85 : vector<8x128xf32>
    %cst_22 = arith.constant 1.000000e+00 : f32
    %87 = vector.broadcast %cst_22 : f32 to vector<8x128xf32>
    %88 = arith.subf %87, %80 : vector<8x128xf32>
    %89 = arith.mulf %88, %86 : vector<8x128xf32>
    %90 = arith.mulf %80, %61 : vector<8x128xf32>
    %91 = arith.addf %89, %90 : vector<8x128xf32>
    %92 = arith.index_cast %65 : i32 to index
    %c0_23 = arith.constant 0 : index
    %93 = vector.load %arg7[%92, %c0_23] : memref<64x128xf32, #tpu.memory_space<vmem>>, vector<8x128xf32>
    tpu.vector_store %arg7[%92, %c0_23], %91 {strides = array<i32>} : memref<64x128xf32, #tpu.memory_space<vmem>>, vector<8x128xf32>,
    %c3_i32 = arith.constant 3 : i32
    %c8_i32_24 = arith.constant 8 : i32
    %94 = arith.muli %c3_i32, %c8_i32_24 : i32
    %95 = tpu.assume_multiple %94, 8 : i32
    %96 = arith.index_cast %95 : i32 to index
    %c0_25 = arith.constant 0 : index
    %97 = vector.load %arg1[%96, %c0_25] : memref<64x384xf32, #tpu.memory_space<vmem>>, vector<8x384xf32>
    %98 = arith.truncf %91 : vector<8x128xf32> to vector<8x128xbf16>
    %c0_26 = arith.constant 0 : index
    %c0_27 = arith.constant 0 : index
    %99 = vector.load %arg2[%c0_26, %c0_27] : memref<128x384xbf16, #tpu.memory_space<vmem>>, vector<128x384xbf16>
    %cst_28 = arith.constant dense<0.000000e+00> : vector<8x384xf32>
    %100 = tpu.matmul %98, %99, %cst_28 {dimension_numbers = #tpu.dot_dimension_numbers<[1], [0], [0], [1], [0, 0, 1, 1], [], []>} : vector<8x128xbf16>, vector<128x384xbf16>, vector<8x384xf32> -> vector<8x384xf32>
    %101 = vector.extract_strided_slice %97 {offsets = [0, 0], sizes = [8, 256], strides = [1, 1]} : vector<8x384xf32> to vector<8x256xf32>
    %102 = vector.extract_strided_slice %100 {offsets = [0, 0], sizes = [8, 256], strides = [1, 1]} : vector<8x384xf32> to vector<8x256xf32>
    %103 = arith.addf %101, %102 : vector<8x256xf32>
    %104 = arith.negf %103 : vector<8x256xf32>
    %105 = math.exp %104 : vector<8x256xf32>
    %cst_29 = arith.constant 1.000000e+00 : f32
    %106 = vector.broadcast %cst_29 : f32 to vector<8x256xf32>
    %107 = arith.addf %106, %105 : vector<8x256xf32>
    %108 = arith.divf %106, %107 : vector<8x256xf32>
    %109 = vector.extract_strided_slice %108 {offsets = [0, 0], sizes = [8, 128], strides = [1, 1]} : vector<8x256xf32> to vector<8x128xf32>
    %110 = vector.extract_strided_slice %108 {offsets = [0, 128], sizes = [8, 128], strides = [1, 1]} : vector<8x256xf32> to vector<8x128xf32>
    %111 = vector.extract_strided_slice %97 {offsets = [0, 256], sizes = [8, 128], strides = [1, 1]} : vector<8x384xf32> to vector<8x128xf32>
    %112 = vector.extract_strided_slice %100 {offsets = [0, 256], sizes = [8, 128], strides = [1, 1]} : vector<8x384xf32> to vector<8x128xf32>
    %113 = arith.addf %112, %2 : vector<8x128xf32>
    %114 = arith.mulf %109, %113 : vector<8x128xf32>
    %115 = arith.addf %111, %114 : vector<8x128xf32>
    %116 = math.tanh %115 : vector<8x128xf32>
    %cst_30 = arith.constant 1.000000e+00 : f32
    %117 = vector.broadcast %cst_30 : f32 to vector<8x128xf32>
    %118 = arith.subf %117, %110 : vector<8x128xf32>
    %119 = arith.mulf %118, %116 : vector<8x128xf32>
    %120 = arith.mulf %110, %91 : vector<8x128xf32>
    %121 = arith.addf %119, %120 : vector<8x128xf32>
    %122 = arith.index_cast %95 : i32 to index
    %c0_31 = arith.constant 0 : index
    %123 = vector.load %arg7[%122, %c0_31] : memref<64x128xf32, #tpu.memory_space<vmem>>, vector<8x128xf32>
    tpu.vector_store %arg7[%122, %c0_31], %121 {strides = array<i32>} : memref<64x128xf32, #tpu.memory_space<vmem>>, vector<8x128xf32>,
    %c4_i32 = arith.constant 4 : i32
    %c8_i32_32 = arith.constant 8 : i32
    %124 = arith.muli %c4_i32, %c8_i32_32 : i32
    %125 = tpu.assume_multiple %124, 8 : i32
    %126 = arith.index_cast %125 : i32 to index
    %c0_33 = arith.constant 0 : index
    %127 = vector.load %arg1[%126, %c0_33] : memref<64x384xf32, #tpu.memory_space<vmem>>, vector<8x384xf32>
    %128 = arith.truncf %121 : vector<8x128xf32> to vector<8x128xbf16>
    %c0_34 = arith.constant 0 : index
    %c0_35 = arith.constant 0 : index
    %129 = vector.load %arg2[%c0_34, %c0_35] : memref<128x384xbf16, #tpu.memory_space<vmem>>, vector<128x384xbf16>
    %cst_36 = arith.constant dense<0.000000e+00> : vector<8x384xf32>
    %130 = tpu.matmul %128, %129, %cst_36 {dimension_numbers = #tpu.dot_dimension_numbers<[1], [0], [0], [1], [0, 0, 1, 1], [], []>} : vector<8x128xbf16>, vector<128x384xbf16>, vector<8x384xf32> -> vector<8x384xf32>
    %131 = vector.extract_strided_slice %127 {offsets = [0, 0], sizes = [8, 256], strides = [1, 1]} : vector<8x384xf32> to vector<8x256xf32>
    %132 = vector.extract_strided_slice %130 {offsets = [0, 0], sizes = [8, 256], strides = [1, 1]} : vector<8x384xf32> to vector<8x256xf32>
    %133 = arith.addf %131, %132 : vector<8x256xf32>
    %134 = arith.negf %133 : vector<8x256xf32>
    %135 = math.exp %134 : vector<8x256xf32>
    %cst_37 = arith.constant 1.000000e+00 : f32
    %136 = vector.broadcast %cst_37 : f32 to vector<8x256xf32>
    %137 = arith.addf %136, %135 : vector<8x256xf32>
    %138 = arith.divf %136, %137 : vector<8x256xf32>
    %139 = vector.extract_strided_slice %138 {offsets = [0, 0], sizes = [8, 128], strides = [1, 1]} : vector<8x256xf32> to vector<8x128xf32>
    %140 = vector.extract_strided_slice %138 {offsets = [0, 128], sizes = [8, 128], strides = [1, 1]} : vector<8x256xf32> to vector<8x128xf32>
    %141 = vector.extract_strided_slice %127 {offsets = [0, 256], sizes = [8, 128], strides = [1, 1]} : vector<8x384xf32> to vector<8x128xf32>
    %142 = vector.extract_strided_slice %130 {offsets = [0, 256], sizes = [8, 128], strides = [1, 1]} : vector<8x384xf32> to vector<8x128xf32>
    %143 = arith.addf %142, %2 : vector<8x128xf32>
    %144 = arith.mulf %139, %143 : vector<8x128xf32>
    %145 = arith.addf %141, %144 : vector<8x128xf32>
    %146 = math.tanh %145 : vector<8x128xf32>
    %cst_38 = arith.constant 1.000000e+00 : f32
    %147 = vector.broadcast %cst_38 : f32 to vector<8x128xf32>
    %148 = arith.subf %147, %140 : vector<8x128xf32>
    %149 = arith.mulf %148, %146 : vector<8x128xf32>
    %150 = arith.mulf %140, %121 : vector<8x128xf32>
    %151 = arith.addf %149, %150 : vector<8x128xf32>
    %152 = arith.index_cast %125 : i32 to index
    %c0_39 = arith.constant 0 : index
    %153 = vector.load %arg7[%152, %c0_39] : memref<64x128xf32, #tpu.memory_space<vmem>>, vector<8x128xf32>
    tpu.vector_store %arg7[%152, %c0_39], %151 {strides = array<i32>} : memref<64x128xf32, #tpu.memory_space<vmem>>, vector<8x128xf32>,
    %c5_i32 = arith.constant 5 : i32
    %c8_i32_40 = arith.constant 8 : i32
    %154 = arith.muli %c5_i32, %c8_i32_40 : i32
    %155 = tpu.assume_multiple %154, 8 : i32
    %156 = arith.index_cast %155 : i32 to index
    %c0_41 = arith.constant 0 : index
    %157 = vector.load %arg1[%156, %c0_41] : memref<64x384xf32, #tpu.memory_space<vmem>>, vector<8x384xf32>
    %158 = arith.truncf %151 : vector<8x128xf32> to vector<8x128xbf16>
    %c0_42 = arith.constant 0 : index
    %c0_43 = arith.constant 0 : index
    %159 = vector.load %arg2[%c0_42, %c0_43] : memref<128x384xbf16, #tpu.memory_space<vmem>>, vector<128x384xbf16>
    %cst_44 = arith.constant dense<0.000000e+00> : vector<8x384xf32>
    %160 = tpu.matmul %158, %159, %cst_44 {dimension_numbers = #tpu.dot_dimension_numbers<[1], [0], [0], [1], [0, 0, 1, 1], [], []>} : vector<8x128xbf16>, vector<128x384xbf16>, vector<8x384xf32> -> vector<8x384xf32>
    %161 = vector.extract_strided_slice %157 {offsets = [0, 0], sizes = [8, 256], strides = [1, 1]} : vector<8x384xf32> to vector<8x256xf32>
    %162 = vector.extract_strided_slice %160 {offsets = [0, 0], sizes = [8, 256], strides = [1, 1]} : vector<8x384xf32> to vector<8x256xf32>
    %163 = arith.addf %161, %162 : vector<8x256xf32>
    %164 = arith.negf %163 : vector<8x256xf32>
    %165 = math.exp %164 : vector<8x256xf32>
    %cst_45 = arith.constant 1.000000e+00 : f32
    %166 = vector.broadcast %cst_45 : f32 to vector<8x256xf32>
    %167 = arith.addf %166, %165 : vector<8x256xf32>
    %168 = arith.divf %166, %167 : vector<8x256xf32>
    %169 = vector.extract_strided_slice %168 {offsets = [0, 0], sizes = [8, 128], strides = [1, 1]} : vector<8x256xf32> to vector<8x128xf32>
    %170 = vector.extract_strided_slice %168 {offsets = [0, 128], sizes = [8, 128], strides = [1, 1]} : vector<8x256xf32> to vector<8x128xf32>
    %171 = vector.extract_strided_slice %157 {offsets = [0, 256], sizes = [8, 128], strides = [1, 1]} : vector<8x384xf32> to vector<8x128xf32>
    %172 = vector.extract_strided_slice %160 {offsets = [0, 256], sizes = [8, 128], strides = [1, 1]} : vector<8x384xf32> to vector<8x128xf32>
    %173 = arith.addf %172, %2 : vector<8x128xf32>
    %174 = arith.mulf %169, %173 : vector<8x128xf32>
    %175 = arith.addf %171, %174 : vector<8x128xf32>
    %176 = math.tanh %175 : vector<8x128xf32>
    %cst_46 = arith.constant 1.000000e+00 : f32
    %177 = vector.broadcast %cst_46 : f32 to vector<8x128xf32>
    %178 = arith.subf %177, %170 : vector<8x128xf32>
    %179 = arith.mulf %178, %176 : vector<8x128xf32>
    %180 = arith.mulf %170, %151 : vector<8x128xf32>
    %181 = arith.addf %179, %180 : vector<8x128xf32>
    %182 = arith.index_cast %155 : i32 to index
    %c0_47 = arith.constant 0 : index
    %183 = vector.load %arg7[%182, %c0_47] : memref<64x128xf32, #tpu.memory_space<vmem>>, vector<8x128xf32>
    tpu.vector_store %arg7[%182, %c0_47], %181 {strides = array<i32>} : memref<64x128xf32, #tpu.memory_space<vmem>>, vector<8x128xf32>,
    %c6_i32 = arith.constant 6 : i32
    %c8_i32_48 = arith.constant 8 : i32
    %184 = arith.muli %c6_i32, %c8_i32_48 : i32
    %185 = tpu.assume_multiple %184, 8 : i32
    %186 = arith.index_cast %185 : i32 to index
    %c0_49 = arith.constant 0 : index
    %187 = vector.load %arg1[%186, %c0_49] : memref<64x384xf32, #tpu.memory_space<vmem>>, vector<8x384xf32>
    %188 = arith.truncf %181 : vector<8x128xf32> to vector<8x128xbf16>
    %c0_50 = arith.constant 0 : index
    %c0_51 = arith.constant 0 : index
    %189 = vector.load %arg2[%c0_50, %c0_51] : memref<128x384xbf16, #tpu.memory_space<vmem>>, vector<128x384xbf16>
    %cst_52 = arith.constant dense<0.000000e+00> : vector<8x384xf32>
    %190 = tpu.matmul %188, %189, %cst_52 {dimension_numbers = #tpu.dot_dimension_numbers<[1], [0], [0], [1], [0, 0, 1, 1], [], []>} : vector<8x128xbf16>, vector<128x384xbf16>, vector<8x384xf32> -> vector<8x384xf32>
    %191 = vector.extract_strided_slice %187 {offsets = [0, 0], sizes = [8, 256], strides = [1, 1]} : vector<8x384xf32> to vector<8x256xf32>
    %192 = vector.extract_strided_slice %190 {offsets = [0, 0], sizes = [8, 256], strides = [1, 1]} : vector<8x384xf32> to vector<8x256xf32>
    %193 = arith.addf %191, %192 : vector<8x256xf32>
    %194 = arith.negf %193 : vector<8x256xf32>
    %195 = math.exp %194 : vector<8x256xf32>
    %cst_53 = arith.constant 1.000000e+00 : f32
    %196 = vector.broadcast %cst_53 : f32 to vector<8x256xf32>
    %197 = arith.addf %196, %195 : vector<8x256xf32>
    %198 = arith.divf %196, %197 : vector<8x256xf32>
    %199 = vector.extract_strided_slice %198 {offsets = [0, 0], sizes = [8, 128], strides = [1, 1]} : vector<8x256xf32> to vector<8x128xf32>
    %200 = vector.extract_strided_slice %198 {offsets = [0, 128], sizes = [8, 128], strides = [1, 1]} : vector<8x256xf32> to vector<8x128xf32>
    %201 = vector.extract_strided_slice %187 {offsets = [0, 256], sizes = [8, 128], strides = [1, 1]} : vector<8x384xf32> to vector<8x128xf32>
    %202 = vector.extract_strided_slice %190 {offsets = [0, 256], sizes = [8, 128], strides = [1, 1]} : vector<8x384xf32> to vector<8x128xf32>
    %203 = arith.addf %202, %2 : vector<8x128xf32>
    %204 = arith.mulf %199, %203 : vector<8x128xf32>
    %205 = arith.addf %201, %204 : vector<8x128xf32>
    %206 = math.tanh %205 : vector<8x128xf32>
    %cst_54 = arith.constant 1.000000e+00 : f32
    %207 = vector.broadcast %cst_54 : f32 to vector<8x128xf32>
    %208 = arith.subf %207, %200 : vector<8x128xf32>
    %209 = arith.mulf %208, %206 : vector<8x128xf32>
    %210 = arith.mulf %200, %181 : vector<8x128xf32>
    %211 = arith.addf %209, %210 : vector<8x128xf32>
    %212 = arith.index_cast %185 : i32 to index
    %c0_55 = arith.constant 0 : index
    %213 = vector.load %arg7[%212, %c0_55] : memref<64x128xf32, #tpu.memory_space<vmem>>, vector<8x128xf32>
    tpu.vector_store %arg7[%212, %c0_55], %211 {strides = array<i32>} : memref<64x128xf32, #tpu.memory_space<vmem>>, vector<8x128xf32>,
    %c7_i32 = arith.constant 7 : i32
    %c8_i32_56 = arith.constant 8 : i32
    %214 = arith.muli %c7_i32, %c8_i32_56 : i32
    %215 = tpu.assume_multiple %214, 8 : i32
    %216 = arith.index_cast %215 : i32 to index
    %c0_57 = arith.constant 0 : index
    %217 = vector.load %arg1[%216, %c0_57] : memref<64x384xf32, #tpu.memory_space<vmem>>, vector<8x384xf32>
    %218 = arith.truncf %211 : vector<8x128xf32> to vector<8x128xbf16>
    %c0_58 = arith.constant 0 : index
    %c0_59 = arith.constant 0 : index
    %219 = vector.load %arg2[%c0_58, %c0_59] : memref<128x384xbf16, #tpu.memory_space<vmem>>, vector<128x384xbf16>
    %cst_60 = arith.constant dense<0.000000e+00> : vector<8x384xf32>
    %220 = tpu.matmul %218, %219, %cst_60 {dimension_numbers = #tpu.dot_dimension_numbers<[1], [0], [0], [1], [0, 0, 1, 1], [], []>} : vector<8x128xbf16>, vector<128x384xbf16>, vector<8x384xf32> -> vector<8x384xf32>
    %221 = vector.extract_strided_slice %217 {offsets = [0, 0], sizes = [8, 256], strides = [1, 1]} : vector<8x384xf32> to vector<8x256xf32>
    %222 = vector.extract_strided_slice %220 {offsets = [0, 0], sizes = [8, 256], strides = [1, 1]} : vector<8x384xf32> to vector<8x256xf32>
    %223 = arith.addf %221, %222 : vector<8x256xf32>
    %224 = arith.negf %223 : vector<8x256xf32>
    %225 = math.exp %224 : vector<8x256xf32>
    %cst_61 = arith.constant 1.000000e+00 : f32
    %226 = vector.broadcast %cst_61 : f32 to vector<8x256xf32>
    %227 = arith.addf %226, %225 : vector<8x256xf32>
    %228 = arith.divf %226, %227 : vector<8x256xf32>
    %229 = vector.extract_strided_slice %228 {offsets = [0, 0], sizes = [8, 128], strides = [1, 1]} : vector<8x256xf32> to vector<8x128xf32>
    %230 = vector.extract_strided_slice %228 {offsets = [0, 128], sizes = [8, 128], strides = [1, 1]} : vector<8x256xf32> to vector<8x128xf32>
    %231 = vector.extract_strided_slice %217 {offsets = [0, 256], sizes = [8, 128], strides = [1, 1]} : vector<8x384xf32> to vector<8x128xf32>
    %232 = vector.extract_strided_slice %220 {offsets = [0, 256], sizes = [8, 128], strides = [1, 1]} : vector<8x384xf32> to vector<8x128xf32>
    %233 = arith.addf %232, %2 : vector<8x128xf32>
    %234 = arith.mulf %229, %233 : vector<8x128xf32>
    %235 = arith.addf %231, %234 : vector<8x128xf32>
    %236 = math.tanh %235 : vector<8x128xf32>
    %cst_62 = arith.constant 1.000000e+00 : f32
    %237 = vector.broadcast %cst_62 : f32 to vector<8x128xf32>
    %238 = arith.subf %237, %230 : vector<8x128xf32>
    %239 = arith.mulf %238, %236 : vector<8x128xf32>
    %240 = arith.mulf %230, %211 : vector<8x128xf32>
    %241 = arith.addf %239, %240 : vector<8x128xf32>
    %242 = arith.index_cast %215 : i32 to index
    %c0_63 = arith.constant 0 : index
    %243 = vector.load %arg7[%242, %c0_63] : memref<64x128xf32, #tpu.memory_space<vmem>>, vector<8x128xf32>
    tpu.vector_store %arg7[%242, %c0_63], %241 {strides = array<i32>} : memref<64x128xf32, #tpu.memory_space<vmem>>, vector<8x128xf32>,
    %c8_i32_64 = arith.constant 8 : i32
    %c0_65 = arith.constant 0 : index
    %c0_66 = arith.constant 0 : index
    %244 = vector.load %arg7[%c0_65, %c0_66] : memref<64x128xf32, #tpu.memory_space<vmem>>, vector<64x128xf32>
    %245 = arith.truncf %244 : vector<64x128xf32> to vector<64x128xbf16>
    %c0_67 = arith.constant 0 : index
    %c0_68 = arith.constant 0 : index
    %246 = vector.load %arg4[%c0_67, %c0_68] : memref<128x128xbf16, #tpu.memory_space<vmem>>, vector<128x128xbf16>
    %cst_69 = arith.constant dense<0.000000e+00> : vector<64x128xf32>
    %247 = tpu.matmul %245, %246, %cst_69 {dimension_numbers = #tpu.dot_dimension_numbers<[1], [0], [0], [1], [0, 0, 1, 1], [], []>} : vector<64x128xbf16>, vector<128x128xbf16>, vector<64x128xf32> -> vector<64x128xf32>
    %c0_70 = arith.constant 0 : index
    %c0_71 = arith.constant 0 : index
    %248 = vector.load %arg5[%c0_70, %c0_71] : memref<1x128xf32, #tpu.memory_space<vmem>>, vector<1x128xf32>
    %249 = vector.broadcast %248 : vector<1x128xf32> to vector<64x128xf32>
    %250 = arith.addf %247, %249 : vector<64x128xf32>
    %c0_72 = arith.constant 0 : index
    %c0_73 = arith.constant 0 : index
    %251 = vector.load %arg6[%c0_72, %c0_73] : memref<64x128xf32, #tpu.memory_space<vmem>>, vector<64x128xf32>
    tpu.vector_store %arg6[%c0_72, %c0_73], %250 {strides = array<i32>} : memref<64x128xf32, #tpu.memory_space<vmem>>, vector<64x128xf32>,
    return
  }
  func.func @transform_0(%arg0: i32) -> (i32, i32) {
    %c0_i32 = arith.constant 0 : i32
    %c0_i32_0 = arith.constant 0 : i32
    %c0_i32_1 = arith.constant 0 : i32
    return %c0_i32, %c0_i32_0 : i32, i32
  }
  func.func @transform_1(%arg0: i32) -> (i32, i32) {
    %c0_i32 = arith.constant 0 : i32
    %c0_i32_0 = arith.constant 0 : i32
    %c0_i32_1 = arith.constant 0 : i32
    return %c0_i32, %c0_i32_0 : i32, i32
  }
  func.func @transform_2(%arg0: i32) -> (i32, i32) {
    %c0_i32 = arith.constant 0 : i32
    %c0_i32_0 = arith.constant 0 : i32
    %c0_i32_1 = arith.constant 0 : i32
    return %c0_i32, %c0_i32_0 : i32, i32
  }
  func.func @transform_3(%arg0: i32) -> (i32, i32) {
    %c0_i32 = arith.constant 0 : i32
    %c0_i32_0 = arith.constant 0 : i32
    %c0_i32_1 = arith.constant 0 : i32
    return %c0_i32, %c0_i32_0 : i32, i32
  }
  func.func @transform_4(%arg0: i32) -> (i32, i32) {
    %c0_i32 = arith.constant 0 : i32
    %c0_i32_0 = arith.constant 0 : i32
    %c0_i32_1 = arith.constant 0 : i32
    return %c0_i32, %c0_i32_0 : i32, i32
  }
  func.func @transform_5(%arg0: i32) -> (i32, i32) {
    %c0_i32 = arith.constant 0 : i32
    %c0_i32_0 = arith.constant 0 : i32
    %c0_i32_1 = arith.constant 0 : i32
    return %c0_i32, %c0_i32_0 : i32, i32
  }
}

</mosaic_0001>

<bundles_post_ra>
// kernel: tpu_custom_call.1
= control target key start
LH: loop header
LB: loop body
LE: loop exit
PB: predicated region body
PF: predicated region fallthrough
CT: control target
= control target key end

     0   :  { %10 = vsyncpa [#allocation4], 0  ;;  %s3656_s0 = inlined_call_operand.hbm [shape: f32[64,384], index: 0, kind: input, shape index: {}]   ;;  %s3657_s1 = inlined_call_operand.hbm [shape: bf16[128,384], index: 1, kind: input, shape index: {}]   ;;  %s3658_s2 = inlined_call_operand.vmem [shape: f32[1,128], index: 2, kind: input, shape index: {}]   ;;  %s3659_s3 = inlined_call_operand.hbm [shape: bf16[128,128], index: 3, kind: input, shape index: {}]   ;;  %s3660_s4 = inlined_call_operand.vmem [shape: f32[1,128], index: 4, kind: input, shape index: {}]   ;;  %s3661_s5 = inlined_call_operand.hbm [shape: f32[64,128], index: 5, kind: output, shape index: {}]  }
   0x1   :  { %11 = vsyncpa [#allocation7], 0 }
   0x2   :  { %12 = vsyncpa [#allocation5], 0  ;;  %s3221_s18 = smov [#allocation6]   ;;  %s3127_s22 = scalar_lea.hbm %s3657_s1, 3072 }
   0x3   :  { %s30_s19 = sshll.u32 %s3221_s18, 4  ;;  %p3128_p0 = scmp.ne.s32.totalorder %s3657_s1, %s3127_s22  ;;  %s31_s19 = int_to_ptr.vmem [resolvable:$true] %s30_s19 }
   0x4   :  { %p3131_p1 = scmp.lt.u32.totalorder %s3127_s22, %s3657_s1 }
   0x6   :  { %p3133_p2 = pnand %p3131_p1, %p3128_p0 }
   0x8   :  { %3136 = shalt.err (!%p3133_p2)
}
   0x9   :  { %s3137_s27 = scalar_lea.vmem %s31_s19, 3072  ;;  %p3142_p4 = scmp.lt.s32.totalorder %s31_s19, %s31_s19 }
   0xa   :  { %p3138_p3 = scmp.ne.s32.totalorder %s31_s19, %s3137_s27  ;;  %p3143_p5 = scmp.lt.s32.totalorder %s3137_s27, %s3137_s27 }
   0xc   :  { %p3144_p6 = por %p3143_p5, %p3142_p4 }
   0xe   :  { %p3145_p7 = pnand %p3144_p6, %p3138_p3 }
  0x10   :  { %3148 = shalt.err (!%p3145_p7)
}
  0x11   :  { %s3222_s28 = smov 192   ;;  %s3223_s29 = smov 12  }
  0x12   :  { %36 = dma.hbm_to_vmem [thread:$0]  %s3657_s1, 3072, %s31_s19, [#allocation7], %s3222_s28, %s3222_s28, %s3223_s29  }
  0x13   :  { %s3224_s7 = smov [#allocation3]   ;;  %s3149_s11 = scalar_lea.hbm %s3656_s0, 3072 }
  0x14   :  { %s18_s8 = sshll.u32 %s3224_s7, 4  ;;  %p3150_p8 = scmp.ne.s32.totalorder %s3656_s0, %s3149_s11  ;;  %s19_s8 = int_to_ptr.vmem [resolvable:$true] %s18_s8 }
  0x15   :  { %p3153_p9 = scmp.lt.u32.totalorder %s3149_s11, %s3656_s0 }
  0x17   :  { %p3155_p10 = pnand %p3153_p9, %p3150_p8 }
  0x19   :  { %3158 = shalt.err (!%p3155_p10)
}
  0x1a   :  { %s3159_s16 = scalar_lea.vmem %s19_s8, 3072  ;;  %p3164_p12 = scmp.lt.s32.totalorder %s19_s8, %s19_s8 }
  0x1b   :  { %p3160_p11 = scmp.ne.s32.totalorder %s19_s8, %s3159_s16  ;;  %p3165_p13 = scmp.lt.s32.totalorder %s3159_s16, %s3159_s16 }
  0x1d   :  { %p3166_p0 = por %p3165_p13, %p3164_p12 }
  0x1f   :  { %p3167_p1 = pnand %p3166_p0, %p3160_p11 }
  0x21   :  { %3170 = shalt.err (!%p3167_p1)
}
  0x22   :  { %s3225_s1 = smov 384   ;;  %s3226_s17 = smov 24  }
  0x23   :  { %24 = dma.hbm_to_vmem [thread:$0]  %s3656_s0, 3072, %s19_s8, [#allocation4], %s3225_s1, %s3225_s1, %s3226_s17  }
  0x24   :  { %s3227_s20 = smov [#allocation8]   ;;  %s3171_s24 = scalar_lea.hbm %s3659_s3, 1024 }
  0x25   :  { %s44_s21 = sshll.u32 %s3227_s20, 4  ;;  %p3172_p2 = scmp.ne.s32.totalorder %s3659_s3, %s3171_s24  ;;  %s45_s21 = int_to_ptr.vmem [resolvable:$true] %s44_s21 }
  0x26   :  { %p3175_p3 = scmp.lt.u32.totalorder %s3171_s24, %s3659_s3 }
  0x28   :  { %p3177_p4 = pnand %p3175_p3, %p3172_p2 }
  0x2a   :  { %3180 = shalt.err (!%p3177_p4)
}
  0x2b   :  { %s3181_s29 = scalar_lea.vmem %s45_s21, 1024  ;;  %p3186_p6 = scmp.lt.s32.totalorder %s45_s21, %s45_s21 }
  0x2c   :  { %p3182_p5 = scmp.ne.s32.totalorder %s45_s21, %s3181_s29  ;;  %p3187_p7 = scmp.lt.s32.totalorder %s3181_s29, %s3181_s29 }
  0x2e   :  { %p3188_p8 = por %p3187_p7, %p3186_p6 }
  0x30   :  { %p3189_p9 = pnand %p3188_p8, %p3182_p5 }
  0x32   :  { %3192 = shalt.err (!%p3189_p9)
}
  0x33   :  { %s3228_s0 = smov 64   ;;  %s3229_s30 = smov 4  }
  0x34   :  { %50 = dma.hbm_to_vmem [thread:$0]  %s3659_s3, 1024, %s45_s21, [#allocation7], %s3228_s0, %s3228_s0, %s3229_s30  }
  0x35   :  { %3215 = dma.done.wait [#allocation4], 3072  }
  0x36   :  { %3216 = vsyncadd [#allocation4], 4294964224 }
  0x37   :  { %3217 = dma.done.wait [#allocation7], 4096  }
  0x38   :  { %3218 = vsyncadd [#allocation7], 4294963200  ;;  %v3230_v0 = vmov 0   ;;  %v3304_v1 = vld [vmem:[#allocation6 + $0x4] ss:$12 sps:$4 sm:$0xff]   ;;  %v3231_v18 = vmov 0.0  }
  0x39   :  { %268 = vmatprep.mubr.bf16.mxu1 %v3230_v0  ;;  %539 = vmatprep.mubr.bf16.mxu0 %v3230_v0  ;;  %v3306_v2 = vld [vmem:[#allocation6] ss:$12 sps:$4 sm:$0xff]   ;;  %v3309_v3 = vld [vmem:[#allocation6 + $0x1c] ss:$12 sps:$4 sm:$0xff]   ;;  %v3313_v4 = vld [vmem:[#allocation6 + $0x18] ss:$12 sps:$4 sm:$0xff]  }
  0x3a   :  { %236 = vmatprep.subr.bf16.mxu1 %v3304_v1  ;;  %507 = vmatprep.subr.bf16.mxu0 %v3304_v1  ;;  %v3317_v5 = vld [vmem:[#allocation6 + $0x34] ss:$12 sps:$4 sm:$0xff]   ;;  %v3321_v6 = vld [vmem:[#allocation6 + $0x30] ss:$12 sps:$4 sm:$0xff]   ;;  %v3325_v7 = vld [vmem:[#allocation6 + $0x4c] ss:$12 sps:$4 sm:$0xff]  }
  0x3b   :  { %237 = vmatpush1.bf16.msra.mxu1 %v3306_v2  ;;  %508 = vmatpush1.bf16.msra.mxu0 %v3306_v2  ;;  %v3329_v8 = vld [vmem:[#allocation6 + $0x48] ss:$12 sps:$4 sm:$0xff]   ;;  %v3333_v9 = vld [vmem:[#allocation6 + $0x64] ss:$12 sps:$4 sm:$0xff]   ;;  %v3337_v10 = vld [vmem:[#allocation6 + $0x60] ss:$12 sps:$4 sm:$0xff]  }
  0x3c   :  { %238 = vmatprep.subr.bf16.mxu1 %v3309_v3  ;;  %509 = vmatprep.subr.bf16.mxu0 %v3309_v3  ;;  %v3341_v11 = vld [vmem:[#allocation6 + $0x7c] ss:$12 sps:$4 sm:$0xff]   ;;  %v3344_v12 = vld [vmem:[#allocation6 + $0x78] ss:$12 sps:$4 sm:$0xff]   ;;  %v3346_v13 = vld [vmem:[#allocation6 + $0x94] ss:$12 sps:$4 sm:$0xff]  }
  0x3d   :  { %v3352_v14 = vld [vmem:[#allocation6 + $0x90] ss:$12 sps:$4 sm:$0xff]   ;;  %v3354_v15 = vld [vmem:[#allocation6 + $0xac] ss:$12 sps:$4 sm:$0xff]   ;;  %v3360_v16 = vld [vmem:[#allocation6 + $0xa8] ss:$12 sps:$4 sm:$0xff]  }
  0x3e   :  { %v2950_v17 = vld [vmem:[#allocation6 + $0x8] ss:$12 sps:$4 sm:$0xff]   ;;  %v2951_v19 = vld [vmem:[#allocation6 + $0x20] ss:$12 sps:$4 sm:$0xff]   ;;  %vm3232_vm0 = vmmov 0  }
  0x3f   :  { %239 = vmatpush1.bf16.msra.mxu1 %v3313_v4  ;;  %510 = vmatpush1.bf16.msra.mxu0 %v3313_v4  ;;  %v2952_v20 = vld [vmem:[#allocation6 + $0x38] ss:$12 sps:$4 sm:$0xff]   ;;  %v2953_v21 = vld [vmem:[#allocation6 + $0x50] ss:$12 sps:$4 sm:$0xff]   ;;  %v2954_v22 = vld [vmem:[#allocation6 + $0x68] ss:$12 sps:$4 sm:$0xff]  }
  0x40   :  { %240 = vmatprep.subr.bf16.mxu1 %v3317_v5  ;;  %511 = vmatprep.subr.bf16.mxu0 %v3317_v5  ;;  %v2955_v23 = vld [vmem:[#allocation6 + $0x80] ss:$12 sps:$4 sm:$0xff]   ;;  %v2956_v24 = vld [vmem:[#allocation6 + $0x98] ss:$12 sps:$4 sm:$0xff]   ;;  %v2957_v25 = vld [vmem:[#allocation6 + $0xb0] ss:$12 sps:$4 sm:$0xff]  }
  0x41   :  { %v2958_v26 = vld [vmem:[#allocation6 + $0x8] ss:$12 sps:$4 sm:$0xff]   ;;  %v2959_v27 = vld [vmem:[#allocation6 + $0x20] ss:$12 sps:$4 sm:$0xff]   ;;  %v2960_v28 = vld [vmem:[#allocation6 + $0x38] ss:$12 sps:$4 sm:$0xff]  }
  0x42   :  { %v2961_v29 = vld [vmem:[#allocation6 + $0x50] ss:$12 sps:$4 sm:$0xff]   ;;  %v2962_v30 = vld [vmem:[#allocation6 + $0x68] ss:$12 sps:$4 sm:$0xff]   ;;  %v2963_v31 = vld [vmem:[#allocation6 + $0x80] ss:$12 sps:$4 sm:$0xff]  }
  0x43   :  { %241 = vmatpush1.bf16.msra.mxu1 %v3321_v6  ;;  %512 = vmatpush1.bf16.msra.mxu0 %v3321_v6  ;;  %v2964_v32 = vld [vmem:[#allocation6 + $0x98] ss:$12 sps:$4 sm:$0xff]   ;;  %v2965_v33 = vld [vmem:[#allocation6 + $0xb0] ss:$12 sps:$4 sm:$0xff]   ;;  %v74_v41 = vld [vmem:[#allocation3 + $0x8] sm:$0xff] }
  0x44   :  { %242 = vmatprep.subr.bf16.mxu1 %v3325_v7  ;;  %513 = vmatprep.subr.bf16.mxu0 %v3325_v7  ;;  %v73_v34 = vld [vmem:[#allocation3] sm:$0xff]  ;;  %v75_v53 = vld [vmem:[#allocation3 + $0x10] sm:$0xff] }
  0x45   :  { %v3395_v47 = vld [vmem:[%s3658_s2] ss:$0 sm:$0xff] }
  0x47   :  { %243 = vmatpush1.bf16.msra.mxu1 %v3329_v8  ;;  %514 = vmatpush1.bf16.msra.mxu0 %v3329_v8 }
  0x48   :  { %244 = vmatprep.subr.bf16.mxu1 %v3333_v9  ;;  %515 = vmatprep.subr.bf16.mxu0 %v3333_v9 }
  0x4b   :  { %245 = vmatpush1.bf16.msra.mxu1 %v3337_v10  ;;  %516 = vmatpush1.bf16.msra.mxu0 %v3337_v10 }
  0x4c   :  { %246 = vmatprep.subr.bf16.mxu1 %v3341_v11  ;;  %517 = vmatprep.subr.bf16.mxu0 %v3341_v11 }
  0x4f   :  { %247 = vmatpush1.bf16.msra.mxu1 %v3344_v12  ;;  %518 = vmatpush1.bf16.msra.mxu0 %v3344_v12 }
  0x50   :  { %248 = vmatprep.subr.bf16.mxu1 %v3346_v13  ;;  %519 = vmatprep.subr.bf16.mxu0 %v3346_v13 }
  0x53   :  { %249 = vmatpush1.bf16.msra.mxu1 %v3352_v14  ;;  %520 = vmatpush1.bf16.msra.mxu0 %v3352_v14 }
  0x54   :  { %250 = vmatprep.subr.bf16.mxu1 %v3354_v15  ;;  %521 = vmatprep.subr.bf16.mxu0 %v3354_v15 }
  0x57   :  { %251 = vmatpush1.bf16.msra.mxu1 %v3360_v16  ;;  %522 = vmatpush1.bf16.msra.mxu0 %v3360_v16 }
  0x58   :  { %2727 = vmatprep.subr.bf16.mxu1 %v3231_v18  ;;  %779 = vmatprep.subr.bf16.mxu0 %v3304_v1 }
  0x5a   :  { %269 = vmatmul.mubr.bf16.vlgmr.msra.gmra.mrb[0].mxu1 %v3230_v0 }
  0x5b   :  { %2728 = vmatpush3.bf16.msra.mxu1 %v2950_v17  ;;  %2743 = vmatprep.mubr.msk.bf16.mxu1 %vm3232_vm0, %v3231_v18 }
  0x5c   :  { %2729 = vmatprep.subr.bf16.mxu1 %v3231_v18 }
  0x5f   :  { %2730 = vmatpush3.bf16.msra.mxu1 %v2951_v19  ;;  %v2966_v19 = vld [vmem:[#allocation6 + $0x8] ss:$12 sps:$4 sm:$0xff]  }
  0x60   :  { %2731 = vmatprep.subr.bf16.mxu1 %v3231_v18 }
  0x63   :  { %2732 = vmatpush3.bf16.msra.mxu1 %v2952_v20  ;;  %v2967_v20 = vld [vmem:[#allocation6 + $0x20] ss:$12 sps:$4 sm:$0xff]  }
  0x64   :  { %2733 = vmatprep.subr.bf16.mxu1 %v3231_v18 }
  0x67   :  { %2734 = vmatpush3.bf16.msra.mxu1 %v2953_v21  ;;  %v2968_v21 = vld [vmem:[#allocation6 + $0x38] ss:$12 sps:$4 sm:$0xff]  }
  0x68   :  { %2735 = vmatprep.subr.bf16.mxu1 %v3231_v18 }
  0x6b   :  { %2736 = vmatpush3.bf16.msra.mxu1 %v2954_v22  ;;  %v2969_v22 = vld [vmem:[#allocation6 + $0x50] ss:$12 sps:$4 sm:$0xff]  }
  0x6c   :  { %2737 = vmatprep.subr.bf16.mxu1 %v3231_v18 }
  0x6f   :  { %2738 = vmatpush3.bf16.msra.mxu1 %v2955_v23  ;;  %v2970_v23 = vld [vmem:[#allocation6 + $0x68] ss:$12 sps:$4 sm:$0xff]  }
  0x70   :  { %2739 = vmatprep.subr.bf16.mxu1 %v3231_v18 }
  0x73   :  { %2740 = vmatpush3.bf16.msra.mxu1 %v2956_v24  ;;  %v2971_v24 = vld [vmem:[#allocation6 + $0x80] ss:$12 sps:$4 sm:$0xff]  }
  0x74   :  { %2741 = vmatprep.subr.bf16.mxu1 %v3231_v18 }
  0x77   :  { %2742 = vmatpush3.bf16.msra.mxu1 %v2957_v25  ;;  %v2972_v25 = vld [vmem:[#allocation6 + $0x98] ss:$12 sps:$4 sm:$0xff]  }
  0x78   :  { %2747 = vmatprep.subr.bf16.mxu1 %v3231_v18 }
  0x7a   :  { %2744 = vmatmul.mubr.bf16.vlgmr.msra.gmra.mrb[4].mxu1 %v3230_v0 }
  0x7b   :  { %2763 = vmatprep.mubr.msk.bf16.mxu1 %vm3232_vm0, %v3231_v18  ;;  %2748 = vmatpush3.bf16.msra.mxu1 %v2958_v26  ;;  %v2973_v26 = vld [vmem:[#allocation6 + $0xb0] ss:$12 sps:$4 sm:$0xff]  }
  0x7c   :  { %2749 = vmatprep.subr.bf16.mxu1 %v3231_v18 }
  0x7f   :  { %2750 = vmatpush3.bf16.msra.mxu1 %v2959_v27  ;;  %v343_v27 = vld [vmem:[#allocation3 + $0x18] sm:$0xff] }
  0x80   :  { %2751 = vmatprep.subr.bf16.mxu1 %v3231_v18 }
  0x83   :  { %2752 = vmatpush3.bf16.msra.mxu1 %v2960_v28 }
  0x84   :  { %2753 = vmatprep.subr.bf16.mxu1 %v3231_v18 }
  0x87   :  { %2754 = vmatpush3.bf16.msra.mxu1 %v2961_v29 }
  0x88   :  { %2755 = vmatprep.subr.bf16.mxu1 %v3231_v18 }
  0x8b   :  { %2756 = vmatpush3.bf16.msra.mxu1 %v2962_v30 }
  0x8c   :  { %2757 = vmatprep.subr.bf16.mxu1 %v3231_v18 }
  0x8f   :  { %2758 = vmatpush3.bf16.msra.mxu1 %v2963_v31  ;;  %v344_v31 = vld [vmem:[#allocation3 + $0x20] sm:$0xff] }
  0x90   :  { %2759 = vmatprep.subr.bf16.mxu1 %v3231_v18 }
  0x93   :  { %2760 = vmatpush3.bf16.msra.mxu1 %v2964_v32 }
  0x94   :  { %2761 = vmatprep.subr.bf16.mxu1 %v3231_v18 }
  0x97   :  { %2762 = vmatpush3.bf16.msra.mxu1 %v2965_v33 }
  0x98   :  { %2767 = vmatprep.subr.bf16.mxu1 %v3231_v18 }
 0x12d   :  { %v270_v35 = vpop.f32.mrb[0].mxu1 }
 0x12e   :  { %v317_v36 = vadd.f32 %v270_v35, %v73_v34  ;;  %v272_v37 = vpop.f32.mrb[1].mxu1 }
 0x12f   :  { %v274_v38 = vpop.f32.mrb[2].mxu1  ;;  %v318_v42 = vadd.f32 %v272_v37, %v74_v41 }
 0x130   :  { %v2450_v39 = vmul.f32 -1.442695, %v317_v36  ;;  %v275_v40 = vpop.f32.mrb[3].mxu1 }
 0x131   :  { %v2451_v43 = vmul.f32 -1.442695, %v318_v42 }
 0x132   :  { %3046 = vpow2.f32 %v2450_v39 }
 0x133   :  { %3048 = vpow2.f32 %v2451_v43 }
 0x13c   :  { %v3047_v44 = vpop.eup %3046 }
 0x13d   :  { %v325_v45 = vadd.f32 1.0, %v3047_v44  ;;  %v3049_v46 = vpop.eup %3048 }
 0x13e   :  { %v326_v48 = vadd.f32 1.0, %v3049_v46 }
 0x13f   :  { %3050 = vrcp.f32 %v325_v45 }
 0x140   :  { %3052 = vrcp.f32 %v326_v48  ;;  %v345_v48 = vld [vmem:[#allocation3 + $0x28] sm:$0xff] }
 0x149   :  { %v3051_v52 = vpop.eup %3050 }
 0x14a   :  { %v3053_v58 = vpop.eup %3052 }
 0x14b   :  { %v335_v59 = vsub.f32 1.0, %v3053_v58  ;;  %v337_v62 = vmul.f32 0.0, %v3053_v58  ;;  %v2974_v58 = vld [vmem:[#allocation6 + $0x8] ss:$12 sps:$4 sm:$0xff]  }
 0x14d   :  { %v311_v49 = vpop.f32.mrb[4].mxu1 }
 0x14e   :  { %v331_v50 = vadd.f32 %v3395_v47, %v311_v49  ;;  %v2745_v51 = vpop.f32.mrb[5].mxu1 }
 0x14f   :  { %v314_v54 = vpop.f32.mrb[6].mxu1 }
 0x150   :  { %v332_v55 = vmul.f32 %v3051_v52, %v331_v50  ;;  %v2746_v56 = vpop.f32.mrb[7].mxu1 }
 0x152   :  { %v333_v57 = vadd.f32 %v332_v55, %v75_v53 }
 0x154   :  { %3054 = vtanh.f32 %v333_v57 }
 0x15e   :  { %v3055_v60 = vpop.eup %3054 }
 0x15f   :  { %v336_v61 = vmul.f32 %v3055_v60, %v335_v59  ;;  %v2975_v59 = vld [vmem:[#allocation6 + $0x20] ss:$12 sps:$4 sm:$0xff]  }
 0x161   :  { %v3398_v63 = vadd.f32 %v337_v62, %v336_v61 }
 0x163   :  { %v346_v17 = vpack.c.bf16 %v3398_v63, %v3398_v63 }
 0x165   :  { %540 = vmatmul.mubr.bf16.vlgmr.msra.gmra.mrb[0].mxu0 %v346_v17  ;;  %2764 = vmatmul.mubr.bf16.vlgmr.msra.gmra.mrb[8].mxu1 %v346_v17  ;;  %v616_v17 = vld [vmem:[#allocation3 + $0x38] sm:$0xff] }
 0x166   :  { %780 = vmatpush1.bf16.msra.mxu0 %v3306_v2  ;;  %811 = vmatprep.mubr.bf16.mxu0 %v3230_v0 }
 0x167   :  { %781 = vmatprep.subr.bf16.mxu0 %v3309_v3  ;;  %2783 = vmatprep.mubr.msk.bf16.mxu1 %vm3232_vm0, %v3231_v18 }
 0x168   :  { %2768 = vmatpush3.bf16.msra.mxu1 %v2966_v19 }
 0x169   :  { %2769 = vmatprep.subr.bf16.mxu1 %v3231_v18 }
 0x16a   :  { %782 = vmatpush1.bf16.msra.mxu0 %v3313_v4 }
 0x16b   :  { %783 = vmatprep.subr.bf16.mxu0 %v3317_v5 }
 0x16c   :  { %2770 = vmatpush3.bf16.msra.mxu1 %v2967_v20 }
 0x16d   :  { %2771 = vmatprep.subr.bf16.mxu1 %v3231_v18 }
 0x16e   :  { %784 = vmatpush1.bf16.msra.mxu0 %v3321_v6 }
 0x16f   :  { %785 = vmatprep.subr.bf16.mxu0 %v3325_v7 }
 0x170   :  { %2772 = vmatpush3.bf16.msra.mxu1 %v2968_v21 }
 0x171   :  { %2773 = vmatprep.subr.bf16.mxu1 %v3231_v18 }
 0x172   :  { %786 = vmatpush1.bf16.msra.mxu0 %v3329_v8 }
 0x173   :  { %787 = vmatprep.subr.bf16.mxu0 %v3333_v9 }
 0x174   :  { %2774 = vmatpush3.bf16.msra.mxu1 %v2969_v22 }
 0x175   :  { %2775 = vmatprep.subr.bf16.mxu1 %v3231_v18 }
 0x176   :  { %788 = vmatpush1.bf16.msra.mxu0 %v3337_v10 }
 0x177   :  { %789 = vmatprep.subr.bf16.mxu0 %v3341_v11 }
 0x178   :  { %2776 = vmatpush3.bf16.msra.mxu1 %v2970_v23 }
 0x179   :  { %2777 = vmatprep.subr.bf16.mxu1 %v3231_v18 }
 0x17a   :  { %790 = vmatpush1.bf16.msra.mxu0 %v3344_v12 }
 0x17b   :  { %791 = vmatprep.subr.bf16.mxu0 %v3346_v13 }
 0x17c   :  { %2778 = vmatpush3.bf16.msra.mxu1 %v2971_v24 }
 0x17d   :  { %2779 = vmatprep.subr.bf16.mxu1 %v3231_v18 }
 0x17e   :  { %792 = vmatpush1.bf16.msra.mxu0 %v3352_v14 }
 0x17f   :  { %793 = vmatprep.subr.bf16.mxu0 %v3354_v15 }
 0x180   :  { %2780 = vmatpush3.bf16.msra.mxu1 %v2972_v25 }
 0x181   :  { %2781 = vmatprep.subr.bf16.mxu1 %v3231_v18 }
 0x182   :  { %794 = vmatpush1.bf16.msra.mxu0 %v3360_v16 }
 0x183   :  { %1051 = vmatprep.subr.bf16.mxu0 %v3304_v1 }
 0x184   :  { %2782 = vmatpush3.bf16.msra.mxu1 %v2973_v26 }
 0x185   :  { %2787 = vmatprep.subr.bf16.mxu1 %v3231_v18 }
 0x238   :  { %v541_v28 = vpop.f32.mrb[0].mxu0  ;;  %v582_v29 = vpop.f32.mrb[8].mxu1 }
 0x239   :  { %v588_v30 = vadd.f32 %v541_v28, %v343_v27  ;;  %v543_v32 = vpop.f32.mrb[1].mxu0  ;;  %v2765_v33 = vpop.f32.mrb[9].mxu1  ;;  %v602_v45 = vadd.f32 %v3395_v47, %v582_v29 }
 0x23a   :  { %v545_v34 = vpop.f32.mrb[2].mxu0  ;;  %v585_v35 = vpop.f32.mrb[10].mxu1  ;;  %v589_v39 = vadd.f32 %v543_v32, %v344_v31 }
 0x23b   :  { %v2476_v36 = vmul.f32 -1.442695, %v588_v30  ;;  %v546_v37 = vpop.f32.mrb[3].mxu0  ;;  %v2766_v38 = vpop.f32.mrb[11].mxu1  ;;  %v617_v34 = vld [vmem:[#allocation3 + $0x40] sm:$0xff] }
 0x23c   :  { %v2477_v40 = vmul.f32 -1.442695, %v589_v39 }
 0x23d   :  { %3056 = vpow2.f32 %v2476_v36 }
 0x23e   :  { %3058 = vpow2.f32 %v2477_v40 }
 0x247   :  { %v3057_v41 = vpop.eup %3056 }
 0x248   :  { %v596_v42 = vadd.f32 1.0, %v3057_v41  ;;  %v3059_v43 = vpop.eup %3058 }
 0x249   :  { %v597_v44 = vadd.f32 1.0, %v3059_v43 }
 0x24a   :  { %3060 = vrcp.f32 %v596_v42 }
 0x24b   :  { %3062 = vrcp.f32 %v597_v44  ;;  %v3493_v44 = vld [vmem:[#allocation6 + $0x90] ss:$12 sps:$4 sm:$0xff]  }
 0x254   :  { %v3061_v46 = vpop.eup %3060 }
 0x255   :  { %v603_v49 = vmul.f32 %v3061_v46, %v602_v45  ;;  %v3063_v51 = vpop.eup %3062  ;;  %v3496_v45 = vld [vmem:[#allocation6 + $0xac] ss:$12 sps:$4 sm:$0xff]  }
 0x256   :  { %v606_v52 = vsub.f32 1.0, %v3063_v51  ;;  %v608_v55 = vmul.f32 %v3063_v51, %v3398_v63  ;;  %v2994_v46 = vld [vmem:[#allocation6 + $0x98] ss:$12 sps:$4 sm:$0xff]  }
 0x257   :  { %v604_v50 = vadd.f32 %v603_v49, %v345_v48  ;;  %v3500_v48 = vld [vmem:[#allocation6 + $0xa8] ss:$12 sps:$4 sm:$0xff]   ;;  %v2998_v49 = vld [vmem:[#allocation6 + $0xb0] ss:$12 sps:$4 sm:$0xff]  }
 0x259   :  { %3064 = vtanh.f32 %v604_v50  ;;  %v887_v50 = vld [vmem:[#allocation3 + $0x48] sm:$0xff] }
 0x263   :  { %v3065_v53 = vpop.eup %3064 }
 0x264   :  { %v607_v54 = vmul.f32 %v3065_v53, %v606_v52 }
 0x266   :  { %v3431_v56 = vadd.f32 %v608_v55, %v607_v54  ;;  %v888_v54 = vld [vmem:[#allocation3 + $0x50] sm:$0xff] }
 0x268   :  { %v618_v57 = vpack.c.bf16 %v3431_v56, %v3431_v56 }
 0x26a   :  { %812 = vmatmul.mubr.bf16.vlgmr.msra.gmra.mrb[4].mxu0 %v618_v57  ;;  %2784 = vmatmul.mubr.bf16.vlgmr.msra.gmra.mrb[12].mxu1 %v618_v57 }
 0x26b   :  { %1052 = vmatpush1.bf16.msra.mxu0 %v3306_v2  ;;  %1083 = vmatprep.mubr.bf16.mxu0 %v3230_v0 }
 0x26c   :  { %1053 = vmatprep.subr.bf16.mxu0 %v3309_v3  ;;  %2803 = vmatprep.mubr.msk.bf16.mxu1 %vm3232_vm0, %v3231_v18 }
 0x26d   :  { %2788 = vmatpush3.bf16.msra.mxu1 %v2974_v58 }
 0x26e   :  { %2789 = vmatprep.subr.bf16.mxu1 %v3231_v18 }
 0x26f   :  { %1054 = vmatpush1.bf16.msra.mxu0 %v3313_v4 }
 0x270   :  { %1055 = vmatprep.subr.bf16.mxu0 %v3317_v5 }
 0x271   :  { %2790 = vmatpush3.bf16.msra.mxu1 %v2975_v59 }
 0x272   :  { %2791 = vmatprep.subr.bf16.mxu1 %v3231_v18 }
 0x273   :  { %1056 = vmatpush1.bf16.msra.mxu0 %v3321_v6 }
 0x274   :  { %1057 = vmatprep.subr.bf16.mxu0 %v3325_v7 }
 0x277   :  { %1058 = vmatpush1.bf16.msra.mxu0 %v3329_v8 }
 0x278   :  { %1059 = vmatprep.subr.bf16.mxu0 %v3333_v9 }
 0x27b   :  { %1060 = vmatpush1.bf16.msra.mxu0 %v3337_v10 }
 0x27c   :  { %1061 = vmatprep.subr.bf16.mxu0 %v3341_v11  ;;  %v2976_v11 = vld [vmem:[#allocation6 + $0x38] ss:$12 sps:$4 sm:$0xff]  }
 0x27d   :  { %2792 = vmatpush3.bf16.msra.mxu1 %v2976_v11 }
 0x27e   :  { %2793 = vmatprep.subr.bf16.mxu1 %v3231_v18 }
 0x27f   :  { %1062 = vmatpush1.bf16.msra.mxu0 %v3344_v12  ;;  %v2977_v12 = vld [vmem:[#allocation6 + $0x50] ss:$12 sps:$4 sm:$0xff]  }
 0x280   :  { %1063 = vmatprep.subr.bf16.mxu0 %v3346_v13  ;;  %v2978_v13 = vld [vmem:[#allocation6 + $0x68] ss:$12 sps:$4 sm:$0xff]  }
 0x281   :  { %2794 = vmatpush3.bf16.msra.mxu1 %v2977_v12 }
 0x282   :  { %2795 = vmatprep.subr.bf16.mxu1 %v3231_v18 }
 0x283   :  { %1064 = vmatpush1.bf16.msra.mxu0 %v3352_v14  ;;  %v2979_v14 = vld [vmem:[#allocation6 + $0x80] ss:$12 sps:$4 sm:$0xff]  }
 0x284   :  { %1065 = vmatprep.subr.bf16.mxu0 %v3354_v15  ;;  %v2981_v15 = vld [vmem:[#allocation6 + $0xb0] ss:$12 sps:$4 sm:$0xff]  }
 0x285   :  { %2796 = vmatpush3.bf16.msra.mxu1 %v2978_v13 }
 0x286   :  { %2797 = vmatprep.subr.bf16.mxu1 %v3231_v18 }
 0x287   :  { %1066 = vmatpush1.bf16.msra.mxu0 %v3360_v16  ;;  %v615_v16 = vld [vmem:[#allocation3 + $0x30] sm:$0xff] }
 0x288   :  { %1323 = vmatprep.subr.bf16.mxu0 %v3304_v1  ;;  %v2980_v1 = vld [vmem:[#allocation6 + $0x98] ss:$12 sps:$4 sm:$0xff]  }
 0x289   :  { %2798 = vmatpush3.bf16.msra.mxu1 %v2979_v14 }
 0x28a   :  { %2799 = vmatprep.subr.bf16.mxu1 %v3231_v18 }
 0x28d   :  { %2800 = vmatpush3.bf16.msra.mxu1 %v2980_v1 }
 0x28e   :  { %2801 = vmatprep.subr.bf16.mxu1 %v3231_v18 }
 0x291   :  { %2802 = vmatpush3.bf16.msra.mxu1 %v2981_v15 }
 0x292   :  { %2807 = vmatprep.subr.bf16.mxu1 %v3231_v18 }
 0x33d   :  { %v813_v60 = vpop.f32.mrb[4].mxu0  ;;  %v854_v61 = vpop.f32.mrb[12].mxu1 }
 0x33e   :  { %v860_v62 = vadd.f32 %v813_v60, %v615_v16  ;;  %v815_v19 = vpop.f32.mrb[5].mxu0  ;;  %v2785_v20 = vpop.f32.mrb[13].mxu1  ;;  %v874_v32 = vadd.f32 %v3395_v47, %v854_v61 }
 0x33f   :  { %v817_v21 = vpop.f32.mrb[6].mxu0  ;;  %v857_v22 = vpop.f32.mrb[14].mxu1  ;;  %v861_v26 = vadd.f32 %v815_v19, %v616_v17  ;;  %v889_v19 = vld [vmem:[#allocation3 + $0x58] sm:$0xff] }
 0x340   :  { %v2502_v23 = vmul.f32 -1.442695, %v860_v62  ;;  %v818_v24 = vpop.f32.mrb[7].mxu0  ;;  %v2786_v25 = vpop.f32.mrb[15].mxu1 }
 0x341   :  { %v2503_v27 = vmul.f32 -1.442695, %v861_v26 }
 0x342   :  { %3066 = vpow2.f32 %v2502_v23 }
 0x343   :  { %3068 = vpow2.f32 %v2503_v27 }
 0x34c   :  { %v3067_v28 = vpop.eup %3066 }
 0x34d   :  { %v868_v29 = vadd.f32 1.0, %v3067_v28  ;;  %v3069_v30 = vpop.eup %3068 }
 0x34e   :  { %v869_v31 = vadd.f32 1.0, %v3069_v30  ;;  %v3517_v30 = vld [vmem:[#allocation6] ss:$12 sps:$4 sm:$0xff]  }
 0x34f   :  { %3070 = vrcp.f32 %v868_v29  ;;  %v3515_v29 = vld [vmem:[#allocation6 + $0x4] ss:$12 sps:$4 sm:$0xff]  }
 0x350   :  { %3072 = vrcp.f32 %v869_v31  ;;  %v3002_v31 = vld [vmem:[#allocation6 + $0x8] ss:$12 sps:$4 sm:$0xff]  }
 0x359   :  { %v3071_v33 = vpop.eup %3070 }
 0x35a   :  { %v875_v35 = vmul.f32 %v3071_v33, %v874_v32  ;;  %v3073_v37 = vpop.eup %3072  ;;  %v3521_v32 = vld [vmem:[#allocation6 + $0x1c] ss:$12 sps:$4 sm:$0xff]   ;;  %v3524_v33 = vld [vmem:[#allocation6 + $0x18] ss:$12 sps:$4 sm:$0xff]  }
 0x35b   :  { %v878_v38 = vsub.f32 1.0, %v3073_v37  ;;  %v880_v41 = vmul.f32 %v3073_v37, %v3431_v56  ;;  %v3010_v37 = vld [vmem:[#allocation6 + $0x38] ss:$12 sps:$4 sm:$0xff]  }
 0x35c   :  { %v876_v36 = vadd.f32 %v875_v35, %v617_v34  ;;  %v3006_v34 = vld [vmem:[#allocation6 + $0x20] ss:$12 sps:$4 sm:$0xff]  }
 0x35d   :  { %v3528_v35 = vld [vmem:[#allocation6 + $0x34] ss:$12 sps:$4 sm:$0xff]  }
 0x35e   :  { %3074 = vtanh.f32 %v876_v36  ;;  %v3531_v36 = vld [vmem:[#allocation6 + $0x30] ss:$12 sps:$4 sm:$0xff]  }
 0x368   :  { %v3075_v39 = vpop.eup %3074 }
 0x369   :  { %v879_v40 = vmul.f32 %v3075_v39, %v878_v38  ;;  %v3535_v38 = vld [vmem:[#allocation6 + $0x4c] ss:$12 sps:$4 sm:$0xff]   ;;  %v3538_v39 = vld [vmem:[#allocation6 + $0x48] ss:$12 sps:$4 sm:$0xff]  }
 0x36b   :  { %v3464_v42 = vadd.f32 %v880_v41, %v879_v40  ;;  %v3014_v40 = vld [vmem:[#allocation6 + $0x50] ss:$12 sps:$4 sm:$0xff]  }
 0x36c   :  { %v3542_v41 = vld [vmem:[#allocation6 + $0x64] ss:$12 sps:$4 sm:$0xff]  }
 0x36d   :  { %v890_v43 = vpack.c.bf16 %v3464_v42, %v3464_v42 }
 0x36f   :  { %1084 = vmatmul.mubr.bf16.vlgmr.msra.gmra.mrb[8].mxu0 %v890_v43  ;;  %2804 = vmatmul.mubr.bf16.vlgmr.msra.gmra.mrb[16].mxu1 %v890_v43  ;;  %v3545_v43 = vld [vmem:[#allocation6 + $0x60] ss:$12 sps:$4 sm:$0xff]  }
 0x370   :  { %1324 = vmatpush1.bf16.msra.mxu0 %v3306_v2  ;;  %1355 = vmatprep.mubr.bf16.mxu0 %v3230_v0  ;;  %v2982_v2 = vld [vmem:[#allocation6 + $0x8] ss:$12 sps:$4 sm:$0xff]  }
 0x371   :  { %1325 = vmatprep.subr.bf16.mxu0 %v3309_v3  ;;  %2823 = vmatprep.mubr.msk.bf16.mxu1 %vm3232_vm0, %v3231_v18  ;;  %v2983_v3 = vld [vmem:[#allocation6 + $0x20] ss:$12 sps:$4 sm:$0xff]  }
 0x372   :  { %2808 = vmatpush3.bf16.msra.mxu1 %v2982_v2  ;;  %v3018_v2 = vld [vmem:[#allocation6 + $0x68] ss:$12 sps:$4 sm:$0xff]  }
 0x373   :  { %2809 = vmatprep.subr.bf16.mxu1 %v3231_v18 }
 0x374   :  { %1326 = vmatpush1.bf16.msra.mxu0 %v3313_v4  ;;  %v2984_v4 = vld [vmem:[#allocation6 + $0x38] ss:$12 sps:$4 sm:$0xff]  }
 0x375   :  { %1327 = vmatprep.subr.bf16.mxu0 %v3317_v5  ;;  %v2985_v5 = vld [vmem:[#allocation6 + $0x50] ss:$12 sps:$4 sm:$0xff]  }
 0x376   :  { %2810 = vmatpush3.bf16.msra.mxu1 %v2983_v3  ;;  %v3019_v3 = vld [vmem:[#allocation6 + $0x80] ss:$12 sps:$4 sm:$0xff]  }
 0x377   :  { %2811 = vmatprep.subr.bf16.mxu1 %v3231_v18 }
 0x378   :  { %1328 = vmatpush1.bf16.msra.mxu0 %v3321_v6  ;;  %v2986_v6 = vld [vmem:[#allocation6 + $0x68] ss:$12 sps:$4 sm:$0xff]  }
 0x379   :  { %1329 = vmatprep.subr.bf16.mxu0 %v3325_v7  ;;  %v3484_v7 = vld [vmem:[#allocation6 + $0x78] ss:$12 sps:$4 sm:$0xff]  }
 0x37a   :  { %2812 = vmatpush3.bf16.msra.mxu1 %v2984_v4  ;;  %v3020_v4 = vld [vmem:[#allocation6 + $0x98] ss:$12 sps:$4 sm:$0xff]  }
 0x37b   :  { %2813 = vmatprep.subr.bf16.mxu1 %v3231_v18 }
 0x37c   :  { %1330 = vmatpush1.bf16.msra.mxu0 %v3329_v8  ;;  %v3486_v8 = vld [vmem:[#allocation6 + $0x7c] ss:$12 sps:$4 sm:$0xff]  }
 0x37d   :  { %1331 = vmatprep.subr.bf16.mxu0 %v3333_v9  ;;  %v3488_v9 = vld [vmem:[#allocation6 + $0x94] ss:$12 sps:$4 sm:$0xff]  }
 0x37e   :  { %2814 = vmatpush3.bf16.msra.mxu1 %v2985_v5  ;;  %v3021_v5 = vld [vmem:[#allocation6 + $0xb0] ss:$12 sps:$4 sm:$0xff]  }
 0x37f   :  { %2815 = vmatprep.subr.bf16.mxu1 %v3231_v18 }
 0x380   :  { %1332 = vmatpush1.bf16.msra.mxu0 %v3337_v10  ;;  %v2990_v10 = vld [vmem:[#allocation6 + $0x80] ss:$12 sps:$4 sm:$0xff]  }
 0x381   :  { %1333 = vmatprep.subr.bf16.mxu0 %v3486_v8 }
 0x382   :  { %2816 = vmatpush3.bf16.msra.mxu1 %v2986_v6  ;;  %v1159_v6 = vld [vmem:[#allocation3 + $0x60] sm:$0xff] }
 0x383   :  { %2817 = vmatprep.subr.bf16.mxu1 %v3231_v18 }
 0x384   :  { %1334 = vmatpush1.bf16.msra.mxu0 %v3484_v7 }
 0x385   :  { %1335 = vmatprep.subr.bf16.mxu0 %v3488_v9 }
 0x386   :  { %2818 = vmatpush3.bf16.msra.mxu1 %v2990_v10 }
 0x387   :  { %2819 = vmatprep.subr.bf16.mxu1 %v3231_v18 }
 0x388   :  { %1336 = vmatpush1.bf16.msra.mxu0 %v3493_v44 }
 0x389   :  { %1337 = vmatprep.subr.bf16.mxu0 %v3496_v45 }
 0x38a   :  { %2820 = vmatpush3.bf16.msra.mxu1 %v2994_v46 }
 0x38b   :  { %2821 = vmatprep.subr.bf16.mxu1 %v3231_v18 }
 0x38c   :  { %1338 = vmatpush1.bf16.msra.mxu0 %v3500_v48 }
 0x38d   :  { %1595 = vmatprep.subr.bf16.mxu0 %v3515_v29 }
 0x38e   :  { %2822 = vmatpush3.bf16.msra.mxu1 %v2998_v49 }
 0x38f   :  { %2827 = vmatprep.subr.bf16.mxu1 %v3231_v18 }
 0x442   :  { %v1085_v51 = vpop.f32.mrb[8].mxu0  ;;  %v1126_v52 = vpop.f32.mrb[16].mxu1 }
 0x443   :  { %v1132_v53 = vadd.f32 %v1085_v51, %v887_v50  ;;  %v1087_v55 = vpop.f32.mrb[9].mxu0  ;;  %v2805_v57 = vpop.f32.mrb[17].mxu1  ;;  %v1146_v62 = vadd.f32 %v3395_v47, %v1126_v52  ;;  %v1160_v50 = vld [vmem:[#allocation3 + $0x68] sm:$0xff] }
 0x444   :  { %v1089_v58 = vpop.f32.mrb[10].mxu0  ;;  %v1129_v59 = vpop.f32.mrb[18].mxu1  ;;  %v1133_v14 = vadd.f32 %v1087_v55, %v888_v54 }
 0x445   :  { %v2528_v11 = vmul.f32 -1.442695, %v1132_v53  ;;  %v1090_v12 = vpop.f32.mrb[11].mxu0  ;;  %v2806_v13 = vpop.f32.mrb[19].mxu1 }
 0x446   :  { %v2529_v1 = vmul.f32 -1.442695, %v1133_v14 }
 0x447   :  { %3076 = vpow2.f32 %v2528_v11 }
 0x448   :  { %3078 = vpow2.f32 %v2529_v1 }
 0x451   :  { %v3077_v15 = vpop.eup %3076 }
 0x452   :  { %v1140_v16 = vadd.f32 1.0, %v3077_v15  ;;  %v3079_v60 = vpop.eup %3078 }
 0x453   :  { %v1141_v61 = vadd.f32 1.0, %v3079_v60  ;;  %v1161_v60 = vld [vmem:[#allocation3 + $0x70] sm:$0xff] }
 0x454   :  { %3080 = vrcp.f32 %v1140_v16 }
 0x455   :  { %3082 = vrcp.f32 %v1141_v61 }
 0x45e   :  { %v3081_v17 = vpop.eup %3080 }
 0x45f   :  { %v1147_v20 = vmul.f32 %v3081_v17, %v1146_v62  ;;  %v3083_v22 = vpop.eup %3082 }
 0x460   :  { %v1150_v23 = vsub.f32 1.0, %v3083_v22  ;;  %v1152_v26 = vmul.f32 %v3083_v22, %v3464_v42 }
 0x461   :  { %v1148_v21 = vadd.f32 %v1147_v20, %v889_v19 }
 0x463   :  { %3084 = vtanh.f32 %v1148_v21 }
 0x46d   :  { %v3085_v24 = vpop.eup %3084 }
 0x46e   :  { %v1151_v25 = vmul.f32 %v3085_v24, %v1150_v23 }
 0x470   :  { %v3508_v27 = vadd.f32 %v1152_v26, %v1151_v25  ;;  %v3022_v25 = vld [vmem:[#allocation6 + $0x8] ss:$12 sps:$4 sm:$0xff]   ;;  %v3023_v26 = vld [vmem:[#allocation6 + $0x20] ss:$12 sps:$4 sm:$0xff]  }
 0x472   :  { %v1162_v28 = vpack.c.bf16 %v3508_v27, %v3508_v27 }
 0x474   :  { %1356 = vmatmul.mubr.bf16.vlgmr.msra.gmra.mrb[12].mxu0 %v1162_v28  ;;  %2824 = vmatmul.mubr.bf16.vlgmr.msra.gmra.mrb[20].mxu1 %v1162_v28  ;;  %v3024_v28 = vld [vmem:[#allocation6 + $0x38] ss:$12 sps:$4 sm:$0xff]  }
 0x475   :  { %1627 = vmatprep.mubr.bf16.mxu0 %v3230_v0  ;;  %2843 = vmatprep.mubr.msk.bf16.mxu1 %vm3232_vm0, %v3231_v18 }
 0x476   :  { %1596 = vmatpush1.bf16.msra.mxu0 %v3517_v30  ;;  %2828 = vmatpush3.bf16.msra.mxu1 %v3002_v31  ;;  %v3025_v31 = vld [vmem:[#allocation6 + $0x50] ss:$12 sps:$4 sm:$0xff]  }
 0x477   :  { %2829 = vmatprep.subr.bf16.mxu1 %v3231_v18  ;;  %1597 = vmatprep.subr.bf16.mxu0 %v3521_v32 }
 0x47a   :  { %1598 = vmatpush1.bf16.msra.mxu0 %v3524_v33  ;;  %2830 = vmatpush3.bf16.msra.mxu1 %v3006_v34  ;;  %v3026_v34 = vld [vmem:[#allocation6 + $0x68] ss:$12 sps:$4 sm:$0xff]  }
 0x47b   :  { %2831 = vmatprep.subr.bf16.mxu1 %v3231_v18  ;;  %1599 = vmatprep.subr.bf16.mxu0 %v3528_v35 }
 0x47e   :  { %1600 = vmatpush1.bf16.msra.mxu0 %v3531_v36  ;;  %2832 = vmatpush3.bf16.msra.mxu1 %v3010_v37  ;;  %v3027_v37 = vld [vmem:[#allocation6 + $0x80] ss:$12 sps:$4 sm:$0xff]  }
 0x47f   :  { %2833 = vmatprep.subr.bf16.mxu1 %v3231_v18  ;;  %1601 = vmatprep.subr.bf16.mxu0 %v3535_v38 }
 0x482   :  { %1602 = vmatpush1.bf16.msra.mxu0 %v3538_v39  ;;  %2834 = vmatpush3.bf16.msra.mxu1 %v3014_v40  ;;  %v3029_v40 = vld [vmem:[#allocation6 + $0xb0] ss:$12 sps:$4 sm:$0xff]  }
 0x483   :  { %2835 = vmatprep.subr.bf16.mxu1 %v3231_v18  ;;  %1603 = vmatprep.subr.bf16.mxu0 %v3542_v41 }
 0x486   :  { %1604 = vmatpush1.bf16.msra.mxu0 %v3545_v43  ;;  %2836 = vmatpush3.bf16.msra.mxu1 %v3018_v2  ;;  %v1431_v2 = vld [vmem:[#allocation3 + $0x78] sm:$0xff] }
 0x487   :  { %1605 = vmatprep.subr.bf16.mxu0 %v3486_v8  ;;  %2837 = vmatprep.subr.bf16.mxu1 %v3231_v18 }
 0x48a   :  { %1606 = vmatpush1.bf16.msra.mxu0 %v3484_v7  ;;  %2838 = vmatpush3.bf16.msra.mxu1 %v3019_v3 }
 0x48b   :  { %1607 = vmatprep.subr.bf16.mxu0 %v3488_v9  ;;  %2839 = vmatprep.subr.bf16.mxu1 %v3231_v18 }
 0x48e   :  { %1608 = vmatpush1.bf16.msra.mxu0 %v3493_v44  ;;  %2840 = vmatpush3.bf16.msra.mxu1 %v3020_v4 }
 0x48f   :  { %1609 = vmatprep.subr.bf16.mxu0 %v3496_v45  ;;  %2841 = vmatprep.subr.bf16.mxu1 %v3231_v18 }
 0x492   :  { %1610 = vmatpush1.bf16.msra.mxu0 %v3500_v48  ;;  %2842 = vmatpush3.bf16.msra.mxu1 %v3021_v5 }
 0x493   :  { %1867 = vmatprep.subr.bf16.mxu0 %v3515_v29  ;;  %2847 = vmatprep.subr.bf16.mxu1 %v3231_v18 }
 0x547   :  { %v1357_v10 = vpop.f32.mrb[12].mxu0  ;;  %v1398_v46 = vpop.f32.mrb[20].mxu1 }
 0x548   :  { %v1404_v49 = vadd.f32 %v1357_v10, %v1159_v6  ;;  %v1359_v51 = vpop.f32.mrb[13].mxu0  ;;  %v2825_v52 = vpop.f32.mrb[21].mxu1  ;;  %v1418_v15 = vadd.f32 %v3395_v47, %v1398_v46  ;;  %v1432_v6 = vld [vmem:[#allocation3 + $0x80] sm:$0xff] }
 0x549   :  { %v1361_v53 = vpop.f32.mrb[14].mxu0  ;;  %v1401_v54 = vpop.f32.mrb[22].mxu1  ;;  %v1405_v59 = vadd.f32 %v1359_v51, %v1160_v50 }
 0x54a   :  { %v2554_v55 = vmul.f32 -1.442695, %v1404_v49  ;;  %v1362_v57 = vpop.f32.mrb[15].mxu0  ;;  %v2826_v58 = vpop.f32.mrb[23].mxu1 }
 0x54b   :  { %v2555_v11 = vmul.f32 -1.442695, %v1405_v59 }
 0x54c   :  { %3086 = vpow2.f32 %v2554_v55 }
 0x54d   :  { %3088 = vpow2.f32 %v2555_v11 }
 0x556   :  { %v3087_v12 = vpop.eup %3086 }
 0x557   :  { %v1412_v13 = vadd.f32 1.0, %v3087_v12  ;;  %v3089_v14 = vpop.eup %3088 }
 0x558   :  { %v1413_v1 = vadd.f32 1.0, %v3089_v14  ;;  %v1433_v14 = vld [vmem:[#allocation3 + $0x88] sm:$0xff] }
 0x559   :  { %3090 = vrcp.f32 %v1412_v13 }
 0x55a   :  { %3092 = vrcp.f32 %v1413_v1 }
 0x563   :  { %v3091_v16 = vpop.eup %3090 }
 0x564   :  { %v1419_v61 = vmul.f32 %v3091_v16, %v1418_v15  ;;  %v3093_v17 = vpop.eup %3092 }
 0x565   :  { %v1422_v19 = vsub.f32 1.0, %v3093_v17  ;;  %v1424_v22 = vmul.f32 %v3093_v17, %v3508_v27 }
 0x566   :  { %v1420_v62 = vadd.f32 %v1419_v61, %v1161_v60 }
 0x568   :  { %3094 = vtanh.f32 %v1420_v62 }
 0x572   :  { %v3095_v20 = vpop.eup %3094 }
 0x573   :  { %v1423_v21 = vmul.f32 %v3095_v20, %v1422_v19 }
 0x575   :  { %v3562_v23 = vadd.f32 %v1424_v22, %v1423_v21 }
 0x577   :  { %v1434_v24 = vpack.c.bf16 %v3562_v23, %v3562_v23 }
 0x579   :  { %1628 = vmatmul.mubr.bf16.vlgmr.msra.gmra.mrb[16].mxu0 %v1434_v24  ;;  %2844 = vmatmul.mubr.bf16.vlgmr.msra.gmra.mrb[24].mxu1 %v1434_v24 }
 0x57a   :  { %1868 = vmatpush1.bf16.msra.mxu0 %v3517_v30  ;;  %1899 = vmatprep.mubr.bf16.mxu0 %v3230_v0 }
 0x57b   :  { %1869 = vmatprep.subr.bf16.mxu0 %v3521_v32  ;;  %2863 = vmatprep.mubr.msk.bf16.mxu1 %vm3232_vm0, %v3231_v18 }
 0x57c   :  { %2848 = vmatpush3.bf16.msra.mxu1 %v3022_v25 }
 0x57d   :  { %2849 = vmatprep.subr.bf16.mxu1 %v3231_v18 }
 0x57e   :  { %1870 = vmatpush1.bf16.msra.mxu0 %v3524_v33 }
 0x57f   :  { %1871 = vmatprep.subr.bf16.mxu0 %v3528_v35 }
 0x580   :  { %2850 = vmatpush3.bf16.msra.mxu1 %v3023_v26 }
 0x581   :  { %2851 = vmatprep.subr.bf16.mxu1 %v3231_v18 }
 0x582   :  { %1872 = vmatpush1.bf16.msra.mxu0 %v3531_v36 }
 0x583   :  { %1873 = vmatprep.subr.bf16.mxu0 %v3535_v38 }
 0x584   :  { %2852 = vmatpush3.bf16.msra.mxu1 %v3024_v28 }
 0x585   :  { %2853 = vmatprep.subr.bf16.mxu1 %v3231_v18 }
 0x586   :  { %1874 = vmatpush1.bf16.msra.mxu0 %v3538_v39 }
 0x587   :  { %1875 = vmatprep.subr.bf16.mxu0 %v3542_v41 }
 0x588   :  { %2854 = vmatpush3.bf16.msra.mxu1 %v3025_v31 }
 0x589   :  { %2855 = vmatprep.subr.bf16.mxu1 %v3231_v18 }
 0x58a   :  { %1876 = vmatpush1.bf16.msra.mxu0 %v3545_v43 }
 0x58b   :  { %1877 = vmatprep.subr.bf16.mxu0 %v3486_v8 }
 0x58c   :  { %2856 = vmatpush3.bf16.msra.mxu1 %v3026_v34 }
 0x58d   :  { %2857 = vmatprep.subr.bf16.mxu1 %v3231_v18 }
 0x58e   :  { %1878 = vmatpush1.bf16.msra.mxu0 %v3484_v7 }
 0x58f   :  { %1879 = vmatprep.subr.bf16.mxu0 %v3488_v9 }
 0x590   :  { %2858 = vmatpush3.bf16.msra.mxu1 %v3027_v37 }
 0x591   :  { %2859 = vmatprep.subr.bf16.mxu1 %v3231_v18 }
 0x592   :  { %1880 = vmatpush1.bf16.msra.mxu0 %v3493_v44 }
 0x593   :  { %1881 = vmatprep.subr.bf16.mxu0 %v3496_v45 }
 0x596   :  { %1882 = vmatpush1.bf16.msra.mxu0 %v3500_v48 }
 0x597   :  { %2139 = vmatprep.subr.bf16.mxu0 %v3515_v29  ;;  %v3028_v29 = vld [vmem:[#allocation6 + $0x98] ss:$12 sps:$4 sm:$0xff]  }
 0x598   :  { %2860 = vmatpush3.bf16.msra.mxu1 %v3028_v29 }
 0x599   :  { %2861 = vmatprep.subr.bf16.mxu1 %v3231_v18 }
 0x59c   :  { %2862 = vmatpush3.bf16.msra.mxu1 %v3029_v40 }
 0x59d   :  { %2867 = vmatprep.subr.bf16.mxu1 %v3231_v18 }
 0x64c   :  { %v1629_v3 = vpop.f32.mrb[16].mxu0  ;;  %v1670_v4 = vpop.f32.mrb[24].mxu1 }
 0x64d   :  { %v1676_v5 = vadd.f32 %v1629_v3, %v1431_v2  ;;  %v1631_v10 = vpop.f32.mrb[17].mxu0  ;;  %v2845_v46 = vpop.f32.mrb[25].mxu1  ;;  %v1690_v12 = vadd.f32 %v3395_v47, %v1670_v4  ;;  %v1705_v3 = vld [vmem:[#allocation3 + $0xa0] sm:$0xff] }
 0x64e   :  { %v1633_v49 = vpop.f32.mrb[18].mxu0  ;;  %v1673_v50 = vpop.f32.mrb[26].mxu1  ;;  %v1677_v54 = vadd.f32 %v1631_v10, %v1432_v6 }
 0x64f   :  { %v2580_v51 = vmul.f32 -1.442695, %v1676_v5  ;;  %v1634_v52 = vpop.f32.mrb[19].mxu0  ;;  %v2846_v53 = vpop.f32.mrb[27].mxu1 }
 0x650   :  { %v2581_v55 = vmul.f32 -1.442695, %v1677_v54  ;;  %v3039_v53 = vld [vmem:[#allocation8 + $0x8] sm:$0xff]   ;;  %v3040_v54 = vld [vmem:[#allocation8 + $0x10] sm:$0xff]  }
 0x651   :  { %3096 = vpow2.f32 %v2580_v51 }
 0x652   :  { %3098 = vpow2.f32 %v2581_v55  ;;  %v3041_v55 = vld [vmem:[#allocation8 + $0x18] sm:$0xff]  }
 0x65b   :  { %v3097_v57 = vpop.eup %3096 }
 0x65c   :  { %v1684_v58 = vadd.f32 1.0, %v3097_v57  ;;  %v3099_v59 = vpop.eup %3098  ;;  %v3042_v57 = vld [vmem:[#allocation8 + $0x20] sm:$0xff]  }
 0x65d   :  { %v1685_v11 = vadd.f32 1.0, %v3099_v59  ;;  %v3044_v59 = vld [vmem:[#allocation8 + $0x30] sm:$0xff]  }
 0x65e   :  { %3100 = vrcp.f32 %v1684_v58  ;;  %v3043_v58 = vld [vmem:[#allocation8 + $0x28] sm:$0xff]  }
 0x65f   :  { %3102 = vrcp.f32 %v1685_v11 }
 0x668   :  { %v3101_v13 = vpop.eup %3100 }
 0x669   :  { %v1691_v1 = vmul.f32 %v3101_v13, %v1690_v12  ;;  %v3103_v16 = vpop.eup %3102  ;;  %v1975_v12 = vld [vmem:[#allocation3 + $0xa8] sm:$0xff] }
 0x66a   :  { %v1694_v60 = vsub.f32 1.0, %v3103_v16  ;;  %v1696_v17 = vmul.f32 %v3103_v16, %v3562_v23 }
 0x66b   :  { %v1692_v15 = vadd.f32 %v1691_v1, %v1433_v14 }
 0x66d   :  { %3104 = vtanh.f32 %v1692_v15  ;;  %v1976_v15 = vld [vmem:[#allocation3 + $0xb0] sm:$0xff] }
 0x677   :  { %v3105_v61 = vpop.eup %3104 }
 0x678   :  { %v1695_v62 = vmul.f32 %v3105_v61, %v1694_v60 }
 0x67a   :  { %v3595_v19 = vadd.f32 %v1696_v17, %v1695_v62 }
 0x67c   :  { %v1706_v20 = vpack.c.bf16 %v3595_v19, %v3595_v19  ;;  %v2254_v11 = vpack.c.bf16 %v3595_v19, %v3562_v23 }
 0x67e   :  { %1900 = vmatmul.mubr.bf16.vlgmr.msra.gmra.mrb[20].mxu0 %v1706_v20  ;;  %2864 = vmatmul.mubr.bf16.vlgmr.msra.gmra.mrb[28].mxu1 %v1706_v20 }
 0x67f   :  { %2140 = vmatpush1.bf16.msra.mxu0 %v3517_v30  ;;  %2171 = vmatprep.mubr.bf16.mxu0 %v3230_v0  ;;  %v3030_v0 = vld [vmem:[#allocation6 + $0x8] ss:$12 sps:$4 sm:$0xff]   ;;  %v3031_v30 = vld [vmem:[#allocation6 + $0x20] ss:$12 sps:$4 sm:$0xff]  }
 0x680   :  { %2141 = vmatprep.subr.bf16.mxu0 %v3521_v32  ;;  %2883 = vmatprep.mubr.msk.bf16.mxu1 %vm3232_vm0, %v3231_v18  ;;  %v3032_v32 = vld [vmem:[#allocation6 + $0x38] ss:$12 sps:$4 sm:$0xff]  }
 0x681   :  { %2868 = vmatpush3.bf16.msra.mxu1 %v3030_v0 }
 0x682   :  { %2869 = vmatprep.subr.bf16.mxu1 %v3231_v18 }
 0x683   :  { %2142 = vmatpush1.bf16.msra.mxu0 %v3524_v33  ;;  %v1703_v33 = vld [vmem:[#allocation3 + $0x90] sm:$0xff] }
 0x684   :  { %2143 = vmatprep.subr.bf16.mxu0 %v3528_v35 }
 0x685   :  { %2870 = vmatpush3.bf16.msra.mxu1 %v3031_v30 }
 0x686   :  { %2871 = vmatprep.subr.bf16.mxu1 %v3231_v18 }
 0x687   :  { %2144 = vmatpush1.bf16.msra.mxu0 %v3531_v36 }
 0x688   :  { %2145 = vmatprep.subr.bf16.mxu0 %v3535_v38 }
 0x689   :  { %2872 = vmatpush3.bf16.msra.mxu1 %v3032_v32 }
 0x68a   :  { %2873 = vmatprep.subr.bf16.mxu1 %v3231_v18 }
 0x68b   :  { %2146 = vmatpush1.bf16.msra.mxu0 %v3538_v39  ;;  %v1704_v39 = vld [vmem:[#allocation3 + $0x98] sm:$0xff] }
 0x68c   :  { %2147 = vmatprep.subr.bf16.mxu0 %v3542_v41 }
 0x68f   :  { %2148 = vmatpush1.bf16.msra.mxu0 %v3545_v43 }
 0x690   :  { %2149 = vmatprep.subr.bf16.mxu0 %v3486_v8  ;;  %v3034_v8 = vld [vmem:[#allocation6 + $0x68] ss:$12 sps:$4 sm:$0xff]  }
 0x693   :  { %2150 = vmatpush1.bf16.msra.mxu0 %v3484_v7  ;;  %v3033_v7 = vld [vmem:[#allocation6 + $0x50] ss:$12 sps:$4 sm:$0xff]  }
 0x694   :  { %2151 = vmatprep.subr.bf16.mxu0 %v3488_v9  ;;  %2874 = vmatpush3.bf16.msra.mxu1 %v3033_v7  ;;  %v3038_v9 = vld [vmem:[#allocation8] sm:$0xff]  }
 0x695   :  { %2875 = vmatprep.subr.bf16.mxu1 %v3231_v18  ;;  %v3126_v7 = vld [vmem:[%s3658_s2] ss:$0 sm:$0xff]  ;;  %s3233_s2 = smov [#allocation9]  }
 0x697   :  { %2152 = vmatpush1.bf16.msra.mxu0 %v3493_v44  ;;  %v3035_v44 = vld [vmem:[#allocation6 + $0x80] ss:$12 sps:$4 sm:$0xff]  }
 0x698   :  { %2153 = vmatprep.subr.bf16.mxu0 %v3496_v45  ;;  %2876 = vmatpush3.bf16.msra.mxu1 %v3034_v8  ;;  %v3036_v45 = vld [vmem:[#allocation6 + $0x98] ss:$12 sps:$4 sm:$0xff]  }
 0x699   :  { %2877 = vmatprep.subr.bf16.mxu1 %v3231_v18 }
 0x69b   :  { %2154 = vmatpush1.bf16.msra.mxu0 %v3500_v48  ;;  %v3037_v48 = vld [vmem:[#allocation6 + $0xb0] ss:$12 sps:$4 sm:$0xff]  }
 0x69c   :  { %2887 = vmatprep.subr.bf16.mxu0 %v3038_v9  ;;  %2878 = vmatpush3.bf16.msra.mxu1 %v3035_v44  ;;  %v1977_v44 = vld [vmem:[#allocation3 + $0xb8] sm:$0xff] }
 0x69d   :  { %2879 = vmatprep.subr.bf16.mxu1 %v3231_v18 }
 0x6a0   :  { %2880 = vmatpush3.bf16.msra.mxu1 %v3036_v45 }
 0x6a1   :  { %2881 = vmatprep.subr.bf16.mxu1 %v3231_v18 }
 0x6a4   :  { %2882 = vmatpush3.bf16.msra.mxu1 %v3037_v48  ;;  %v2634_v48 = vld [vmem:[%s3660_s4] ss:$0 sm:$0xff]  ;;  %s2405_s4 = sshll.u32 %s3233_s2, 4  ;;  %s2406_s4 = int_to_ptr.vmem [resolvable:$true] %s2405_s4 }
 0x6a5   :  { %s3193_s13 = scalar_lea.vmem %s2406_s4, 1024  ;;  %p3198_p11 = scmp.lt.s32.totalorder %s2406_s4, %s2406_s4 }
 0x6a6   :  { %p3194_p10 = scmp.ne.s32.totalorder %s2406_s4, %s3193_s13  ;;  %p3199_p12 = scmp.lt.s32.totalorder %s3193_s13, %s3193_s13 }
 0x6a8   :  { %p3200_p13 = por %p3199_p12, %p3198_p11 }
 0x6aa   :  { %p3201_p0 = pnand %p3200_p13, %p3194_p10 }
 0x751   :  { %v1901_v35 = vpop.f32.mrb[20].mxu0  ;;  %v1942_v36 = vpop.f32.mrb[28].mxu1 }
 0x752   :  { %v1948_v38 = vadd.f32 %v1901_v35, %v1703_v33  ;;  %v1903_v41 = vpop.f32.mrb[21].mxu0  ;;  %v2865_v43 = vpop.f32.mrb[29].mxu1  ;;  %v1962_v40 = vadd.f32 %v3395_v47, %v1942_v36  ;;  %v2252_v47 = vpack.c.bf16 %v3431_v56, %v3398_v63  ;;  %v3045_v63 = vld [vmem:[#allocation8 + $0x38] sm:$0xff]   ;;  %v2253_v56 = vpack.c.bf16 %v3508_v27, %v3464_v42 }
 0x753   :  { %v1905_v21 = vpop.f32.mrb[22].mxu0  ;;  %v1945_v22 = vpop.f32.mrb[30].mxu1  ;;  %v1949_v28 = vadd.f32 %v1903_v41, %v1704_v39 }
 0x754   :  { %v2606_v24 = vmul.f32 -1.442695, %v1948_v38  ;;  %v1906_v25 = vpop.f32.mrb[23].mxu0  ;;  %v2866_v26 = vpop.f32.mrb[31].mxu1 }
 0x755   :  { %v2607_v31 = vmul.f32 -1.442695, %v1949_v28 }
 0x756   :  { %3106 = vpow2.f32 %v2606_v24 }
 0x757   :  { %3108 = vpow2.f32 %v2607_v31 }
 0x760   :  { %v3107_v34 = vpop.eup %3106 }
 0x761   :  { %v1956_v37 = vadd.f32 1.0, %v3107_v34  ;;  %v3109_v18 = vpop.eup %3108 }
 0x762   :  { %v1957_v29 = vadd.f32 1.0, %v3109_v18 }
 0x763   :  { %3110 = vrcp.f32 %v1956_v37 }
 0x764   :  { %3112 = vrcp.f32 %v1957_v29 }
 0x76d   :  { %v3111_v2 = vpop.eup %3110 }
 0x76e   :  { %v1963_v4 = vmul.f32 %v3111_v2, %v1962_v40  ;;  %v3113_v6 = vpop.eup %3112 }
 0x76f   :  { %v1966_v10 = vsub.f32 1.0, %v3113_v6  ;;  %v1968_v50 = vmul.f32 %v3113_v6, %v3595_v19 }
 0x770   :  { %v1964_v5 = vadd.f32 %v1963_v4, %v1705_v3 }
 0x772   :  { %3114 = vtanh.f32 %v1964_v5 }
 0x77c   :  { %v3115_v46 = vpop.eup %3114 }
 0x77d   :  { %v1967_v49 = vmul.f32 %v3115_v46, %v1966_v10 }
 0x77f   :  { %v3626_v51 = vadd.f32 %v1968_v50, %v1967_v49 }
 0x781   :  { %v1978_v52 = vpack.c.bf16 %v3626_v51, %v3626_v51 }
 0x783   :  { %2172 = vmatmul.mubr.bf16.vlgmr.msra.gmra.mrb[24].mxu0 %v1978_v52  ;;  %2884 = vmatmul.mubr.bf16.vlgmr.msra.gmra.mrb[32].mxu1 %v1978_v52 }
 0x784   :  { %2888 = vmatpush3.bf16.msra.mxu0 %v3038_v9  ;;  %2903 = vmatprep.mubr.bf16.mxu0 %v2252_v47 }
 0x785   :  { %2889 = vmatprep.subr.bf16.mxu0 %v3039_v53 }
 0x788   :  { %2890 = vmatpush3.bf16.msra.mxu0 %v3039_v53 }
 0x789   :  { %2891 = vmatprep.subr.bf16.mxu0 %v3040_v54 }
 0x78c   :  { %2892 = vmatpush3.bf16.msra.mxu0 %v3040_v54 }
 0x78d   :  { %2893 = vmatprep.subr.bf16.mxu0 %v3041_v55 }
 0x790   :  { %2894 = vmatpush3.bf16.msra.mxu0 %v3041_v55 }
 0x791   :  { %2895 = vmatprep.subr.bf16.mxu0 %v3042_v57 }
 0x794   :  { %2896 = vmatpush3.bf16.msra.mxu0 %v3042_v57 }
 0x795   :  { %2897 = vmatprep.subr.bf16.mxu0 %v3043_v58 }
 0x798   :  { %2898 = vmatpush3.bf16.msra.mxu0 %v3043_v58 }
 0x799   :  { %2899 = vmatprep.subr.bf16.mxu0 %v3044_v59 }
 0x79c   :  { %2900 = vmatpush3.bf16.msra.mxu0 %v3044_v59 }
 0x79d   :  { %2901 = vmatprep.subr.bf16.mxu0 %v3045_v63 }
 0x7a0   :  { %2902 = vmatpush3.bf16.msra.mxu0 %v3045_v63 }
 0x7a3   :  { %2904 = vmatmul.mubr.bf16.vlgmr.msra.gmra.mrb[28].mxu0 %v2253_v56 }
 0x7a4   :  { %2907 = vmatprep.mubr.bf16.mxu0 %v2254_v11 }
 0x856   :  { %v2173_v13 = vpop.f32.mrb[24].mxu0  ;;  %v2214_v14 = vpop.f32.mrb[32].mxu1 }
 0x857   :  { %v2220_v1 = vadd.f32 %v2173_v13, %v1975_v12  ;;  %v2175_v16 = vpop.f32.mrb[25].mxu0  ;;  %v2885_v60 = vpop.f32.mrb[33].mxu1  ;;  %v2234_v8 = vadd.f32 %v3126_v7, %v2214_v14 }
 0x858   :  { %v2177_v61 = vpop.f32.mrb[26].mxu0  ;;  %v2217_v62 = vpop.f32.mrb[34].mxu1  ;;  %v2221_v30 = vadd.f32 %v2175_v16, %v1976_v15 }
 0x859   :  { %v2632_v17 = vmul.f32 -1.442695, %v2220_v1  ;;  %v2178_v20 = vpop.f32.mrb[27].mxu0  ;;  %v2886_v0 = vpop.f32.mrb[35].mxu1 }
 0x85a   :  { %v2633_v42 = vmul.f32 -1.442695, %v2221_v30 }
 0x85b   :  { %3116 = vpow2.f32 %v2632_v17 }
 0x85c   :  { %3118 = vpow2.f32 %v2633_v42 }
 0x865   :  { %v3117_v27 = vpop.eup %3116 }
 0x866   :  { %v2228_v23 = vadd.f32 1.0, %v3117_v27  ;;  %v3119_v19 = vpop.eup %3118 }
 0x867   :  { %v2229_v32 = vadd.f32 1.0, %v3119_v19 }
 0x868   :  { %3120 = vrcp.f32 %v2228_v23 }
 0x869   :  { %3122 = vrcp.f32 %v2229_v32 }
 0x872   :  { %v3121_v9 = vpop.eup %3120 }
 0x873   :  { %v2235_v45 = vmul.f32 %v3121_v9, %v2234_v8  ;;  %v3123_v24 = vpop.eup %3122 }
 0x874   :  { %v2238_v25 = vsub.f32 1.0, %v3123_v24  ;;  %v2240_v31 = vmul.f32 %v3123_v24, %v3626_v51 }
 0x875   :  { %v2236_v33 = vadd.f32 %v2235_v45, %v1977_v44 }
 0x876   :  { %v2905_v35 = vpop.f32.mrb[28].mxu0 }
 0x877   :  { %3124 = vtanh.f32 %v2236_v33  ;;  %v2370_v36 = vadd.f32 %v2905_v35, %v2634_v48  ;;  %v2361_v38 = vpop.f32.mrb[29].mxu0 }
 0x878   :  { %v2362_v39 = vadd.f32 %v2634_v48, %v2361_v38  ;;  %v2906_v41 = vpop.f32.mrb[30].mxu0 }
 0x879   :  { %2394 = vst [vmem:[#allocation9 + $0x10] sm:$0xff] %v2370_v36  ;;  %v2373_v43 = vadd.f32 %v2906_v41, %v2634_v48  ;;  %v2364_v21 = vpop.f32.mrb[31].mxu0 }
 0x87a   :  { %2392 = vst [vmem:[#allocation9] sm:$0xff] %v2362_v39  ;;  %v2365_v22 = vadd.f32 %v2634_v48, %v2364_v21 }
 0x87b   :  { %2395 = vst [vmem:[#allocation9 + $0x18] sm:$0xff] %v2373_v43 }
 0x87c   :  { %2393 = vst [vmem:[#allocation9 + $0x8] sm:$0xff] %v2365_v22 }
 0x881   :  { %v3125_v26 = vpop.eup %3124 }
 0x882   :  { %v2239_v28 = vmul.f32 %v3125_v26, %v2238_v25 }
 0x884   :  { %v2241_v34 = vadd.f32 %v2240_v31, %v2239_v28 }
 0x886   :  { %v2255_v37 = vpack.c.bf16 %v2241_v34, %v3626_v51 }
 0x888   :  { %2908 = vmatmul.mubr.bf16.gmra.mrb[32].mxu0 %v2255_v37 }
 0x95b   :  { %v2909_v18 = vpop.f32.mrb[32].mxu0 }
 0x95c   :  { %v2386_v29 = vadd.f32 %v2909_v18, %v2634_v48  ;;  %v2377_v40 = vpop.f32.mrb[33].mxu0 }
 0x95d   :  { %v2378_v2 = vadd.f32 %v2634_v48, %v2377_v40  ;;  %v2910_v3 = vpop.f32.mrb[34].mxu0 }
 0x95e   :  { %2398 = vst [vmem:[#allocation9 + $0x30] sm:$0xff] %v2386_v29  ;;  %v2389_v4 = vadd.f32 %v2910_v3, %v2634_v48  ;;  %v2380_v5 = vpop.f32.mrb[35].mxu0 }
 0x95f   :  { %2396 = vst [vmem:[#allocation9 + $0x20] sm:$0xff] %v2378_v2  ;;  %v2381_v6 = vadd.f32 %v2634_v48, %v2380_v5 }
 0x960   :  { %2399 = vst [vmem:[#allocation9 + $0x38] sm:$0xff] %v2389_v4 }
 0x961   :  { %2397 = vst [vmem:[#allocation9 + $0x28] sm:$0xff] %v2381_v6 }
 0x962   :  { %3204 = shalt.err (!%p3201_p0)
}
 0x963   :  { %s3205_s16 = scalar_lea.hbm %s3661_s5, 1024 }
 0x964   :  { %p3206_p1 = scmp.ne.s32.totalorder %s3661_s5, %s3205_s16  ;;  %p3209_p2 = scmp.lt.u32.totalorder %s3205_s16, %s3661_s5 }
 0x966   :  { %p3211_p3 = pnand %p3209_p2, %p3206_p1 }
 0x968   :  { %3214 = shalt.err (!%p3211_p3)
}
 0x969   :  { %s3234_s20 = smov 128   ;;  %s3235_s21 = smov 8  }
 0x96a   :  { %2411 = dma.vmem_to_hbm [thread:$0]  %s2406_s4, 1024, %s3661_s5, [#allocation5], %s3234_s20, %s3234_s20, %s3235_s21  }
 0x96b   :  { %3219 = dma.done.wait [#allocation5], 1024  }
 0x96c   :  { %3220 = vsyncadd [#allocation5], 4294966272 }
 0x96d   :  { %2415 = vsyncpa [#allocation4], 1 }
 0x96e   :  { %2416 = vsyncpa [#allocation7], 1 }
 0x96f   :  { %2417 = vsyncpa [#allocation5], 1 }

</bundles_post_ra>
